<compile_context>
chip_gen: v7x
topology: tpu7x:2x2x1
jax: 0.10.0
libtpu: 0.0.40
codegen_flags: <defaults>
</compile_context>

<pallas_src>
import jax
import jax.numpy as jnp
from jax.experimental import pallas as pl
from jax.experimental.pallas import tpu as pltpu


LANE = 128  # TPU lane width


def _round_up(n, m):
    return ((n + m - 1) // m) * m


def mlp_kernel(x_ref,
               w1_ref, b1_ref,
               w2_ref, b2_ref,
               w3_ref, b3_ref,
               w4_ref, b4_ref,
               o_ref):
    # x tile: f32 [TILE_B, F] -> cast to bf16 in-kernel (VPU filler).
    x = x_ref[...].astype(jnp.bfloat16)

    # Biases are f32 (1, N); bias-add + ReLU run in f32 on the VPU.
    b1 = b1_ref[...]
    b2 = b2_ref[...]
    b3 = b3_ref[...]
    b4 = b4_ref[...]

    h = jnp.dot(x, w1_ref[...], preferred_element_type=jnp.float32) + b1
    h = jnp.maximum(h, 0.0).astype(jnp.bfloat16)

    h = jnp.dot(h, w2_ref[...], preferred_element_type=jnp.float32) + b2
    h = jnp.maximum(h, 0.0).astype(jnp.bfloat16)

    h = jnp.dot(h, w3_ref[...], preferred_element_type=jnp.float32) + b3
    h = jnp.maximum(h, 0.0).astype(jnp.bfloat16)

    out = jnp.dot(h, w4_ref[...], preferred_element_type=jnp.float32) + b4
    o_ref[...] = out.astype(o_ref.dtype)


def prepare_params(params):
    """One-time param prep (do NOT call per forward):
    - cast weights to bf16 for the MXU,
    - pad the last layer (W4/b4) out to a multiple of 128 lanes with zeros so
      output stores are lane-dense / unmasked.
    Returns (prepared_tuple, num_classes).
    """
    (w1, b1), (w2, b2), (w3, b3), (w4, b4) = params
    num_classes = w4.shape[1]
    padded_out = _round_up(num_classes, LANE)

    w4p = jnp.pad(w4, ((0, 0), (0, padded_out - num_classes)))
    b4p = jnp.pad(b4, ((0, 0), (0, padded_out - num_classes)))

    prepared = (
        w1.astype(jnp.bfloat16), b1.astype(jnp.float32),
        w2.astype(jnp.bfloat16), b2.astype(jnp.float32),
        w3.astype(jnp.bfloat16), b3.astype(jnp.float32),
        w4p.astype(jnp.bfloat16), b4p.astype(jnp.float32),
    )
    return prepared, num_classes


def neural_net_forward(x, prepared, num_classes, *, tile_b=None):
    """Fused forward pass.

    x: f32 [B, F]; prepared: output of prepare_params (bf16 weights, f32
    biases, last layer lane-padded). Returns f32 [B, num_classes].
    """
    w1, b1, w2, b2, w3, b3, w4, b4 = prepared
    B, F = x.shape
    padded_out = w4.shape[1]

    # Tile sizing: single grid step for small B (minimal padding, no wasted
    # second step); cap at 2048 rows/tile for large B (VMEM stays tiny).
    if tile_b is None:
        tile_b = _round_up(B, 16) if B <= 2048 else 2048

    num_tiles = pl.cdiv(B, tile_b)
    b_pad = num_tiles * tile_b
    if b_pad != B:
        x = jnp.pad(x, ((0, b_pad - B), (0, 0)))

    # Weight/bias blocks are the full arrays at a constant block index ->
    # resident in VMEM, DMA'd once across the whole grid.
    def resident(arr):
        return pl.BlockSpec(arr.shape, lambda i: (0, 0))

    out = pl.pallas_call(
        mlp_kernel,
        out_shape=jax.ShapeDtypeStruct((b_pad, padded_out), jnp.float32),
        grid=(num_tiles,),
        in_specs=[
            pl.BlockSpec((tile_b, F), lambda i: (i, 0)),      # x: batch-tiled
            resident(w1), resident(b1),
            resident(w2), resident(b2),
            resident(w3), resident(b3),
            resident(w4), resident(b4),
        ],
        out_specs=pl.BlockSpec((tile_b, padded_out), lambda i: (i, 0)),
        compiler_params=pltpu.CompilerParams(
            dimension_semantics=("parallel",)),               # megacore on v7x
    )(x, w1, b1, w2, b2, w3, b3, w4, b4)

    return out[:B, :num_classes]


def init_params(key, input_size, num_classes):
    """Deterministic init mimicking nn.Linear (uniform(-1/sqrt(fan_in), +1/sqrt(fan_in)))."""
    dims = [(input_size, 128), (128, 64), (64, 32), (32, num_classes)]
    params = []
    for (fan_in, fan_out) in dims:
        key, kw, kb = jax.random.split(key, 3)
        bound = 1.0 / jnp.sqrt(fan_in)
        # Stored as [in, out] (transpose of PyTorch's [out, in]) so kernel does x @ W.
        w = jax.random.uniform(kw, (fan_in, fan_out), jnp.float32, -bound, bound)
        b = jax.random.uniform(kb, (1, fan_out), jnp.float32, -bound, bound)
        params.append((w, b))
    return params


def reference_forward_bf16(x, params):
    """Pure-JAX reference that mirrors the kernel's bf16-input / f32-accumulate math."""
    h = x.astype(jnp.bfloat16)
    for i, (w, b) in enumerate(params):
        h = jnp.dot(h.astype(jnp.float32),
                    w.astype(jnp.bfloat16).astype(jnp.float32)) + b
        if i < len(params) - 1:
            h = jnp.maximum(h, 0.0).astype(jnp.bfloat16)
    return h


def reference_forward_f32(x, params):
    h = x
    for i, (w, b) in enumerate(params):
        h = h @ w + b
        if i < len(params) - 1:
            h = jnp.maximum(h, 0.0)
    return h


if __name__ == "__main__":
    key = jax.random.PRNGKey(0)
    key, kx, kp = jax.random.split(key, 3)

    batch = 300          # not a multiple of 16 -> exercises batch padding
    input_size = 16      # number of (already standardized) features
    num_classes = 6      # ['No','Ephemeral','Intermittent','Transitional','Small','Large']
    # TODO(synk): StandardScaler preprocessing lives outside the nn.Module; inputs
    # here are assumed already standardized.

    x = jax.random.normal(kx, (batch, input_size), jnp.float32)
    params = init_params(kp, input_size, num_classes)

    # One-time param prep (bf16 weights, lane-padded output layer).
    prepared, n_cls = prepare_params(params)

    out = neural_net_forward(x, prepared, n_cls)
    out = jax.block_until_ready(out)
    assert out.shape == (batch, num_classes)

    # Exact-path check vs. a bf16-emulated reference (same rounding of inputs,
    # f32 accumulation) and a sanity check vs. the full-f32 reference.
    ref_bf16 = reference_forward_bf16(x, params)
    ref_f32 = reference_forward_f32(x, params)
    assert jnp.allclose(out, ref_bf16, atol=1e-3, rtol=1e-3)
    assert jnp.allclose(out, ref_f32, atol=5e-2, rtol=5e-2)

    print("KERNEL_OK")
</pallas_src>

<mosaic_0001>
module attributes {stable_mosaic.version = 11 : i64} {
  func.func @mlp_kernel(%arg0: i32, %arg1: memref<304x16xf32, #tpu.memory_space<vmem>>, %arg2: memref<16x128xbf16, #tpu.memory_space<vmem>>, %arg3: memref<1x128xf32, #tpu.memory_space<vmem>>, %arg4: memref<128x64xbf16, #tpu.memory_space<vmem>>, %arg5: memref<1x64xf32, #tpu.memory_space<vmem>>, %arg6: memref<64x32xbf16, #tpu.memory_space<vmem>>, %arg7: memref<1x32xf32, #tpu.memory_space<vmem>>, %arg8: memref<32x128xbf16, #tpu.memory_space<vmem>>, %arg9: memref<1x128xf32, #tpu.memory_space<vmem>>, %arg10: memref<304x128xf32, #tpu.memory_space<vmem>>) attributes {dimension_semantics = [#tpu.dimension_semantics<parallel>], iteration_bounds = array<i64: 1>, scalar_prefetch = 0 : i64, scratch_operands = 0 : i64, tpu.core_type = #tpu.core_type<tc>, window_params = [{transform_indices = @transform_0, window_bounds = array<i64: 304, 16>}, {pipeline_mode = #tpu.pipeline_mode<synchronous>, transform_indices = @transform_1, window_bounds = array<i64: 16, 128>}, {pipeline_mode = #tpu.pipeline_mode<synchronous>, transform_indices = @transform_2, window_bounds = array<i64: 1, 128>}, {pipeline_mode = #tpu.pipeline_mode<synchronous>, transform_indices = @transform_3, window_bounds = array<i64: 128, 64>}, {pipeline_mode = #tpu.pipeline_mode<synchronous>, transform_indices = @transform_4, window_bounds = array<i64: 1, 64>}, {pipeline_mode = #tpu.pipeline_mode<synchronous>, transform_indices = @transform_5, window_bounds = array<i64: 64, 32>}, {pipeline_mode = #tpu.pipeline_mode<synchronous>, transform_indices = @transform_6, window_bounds = array<i64: 1, 32>}, {pipeline_mode = #tpu.pipeline_mode<synchronous>, transform_indices = @transform_7, window_bounds = array<i64: 32, 128>}, {pipeline_mode = #tpu.pipeline_mode<synchronous>, transform_indices = @transform_8, window_bounds = array<i64: 1, 128>}, {transform_indices = @transform_9, window_bounds = array<i64: 304, 128>}]} {
    %c0 = arith.constant 0 : index
    %c0_0 = arith.constant 0 : index
    %0 = vector.load %arg1[%c0, %c0_0] : memref<304x16xf32, #tpu.memory_space<vmem>>, vector<304x16xf32>
    %1 = arith.truncf %0 : vector<304x16xf32> to vector<304x16xbf16>
    %c0_1 = arith.constant 0 : index
    %c0_2 = arith.constant 0 : index
    %2 = vector.load %arg3[%c0_1, %c0_2] : memref<1x128xf32, #tpu.memory_space<vmem>>, vector<1x128xf32>
    %c0_3 = arith.constant 0 : index
    %c0_4 = arith.constant 0 : index
    %3 = vector.load %arg5[%c0_3, %c0_4] : memref<1x64xf32, #tpu.memory_space<vmem>>, vector<1x64xf32>
    %c0_5 = arith.constant 0 : index
    %c0_6 = arith.constant 0 : index
    %4 = vector.load %arg7[%c0_5, %c0_6] : memref<1x32xf32, #tpu.memory_space<vmem>>, vector<1x32xf32>
    %c0_7 = arith.constant 0 : index
    %c0_8 = arith.constant 0 : index
    %5 = vector.load %arg9[%c0_7, %c0_8] : memref<1x128xf32, #tpu.memory_space<vmem>>, vector<1x128xf32>
    %c0_9 = arith.constant 0 : index
    %c0_10 = arith.constant 0 : index
    %6 = vector.load %arg2[%c0_9, %c0_10] : memref<16x128xbf16, #tpu.memory_space<vmem>>, vector<16x128xbf16>
    %cst = arith.constant dense<0.000000e+00> : vector<304x128xf32>
    %7 = tpu.matmul %1, %6, %cst {dimension_numbers = #tpu.dot_dimension_numbers<[1], [0], [0], [1], [0, 0, 1, 1], [], []>} : vector<304x16xbf16>, vector<16x128xbf16>, vector<304x128xf32> -> vector<304x128xf32>
    %8 = vector.broadcast %2 : vector<1x128xf32> to vector<304x128xf32>
    %9 = arith.addf %7, %8 : vector<304x128xf32>
    %cst_11 = arith.constant 0.000000e+00 : f32
    %10 = vector.broadcast %cst_11 : f32 to vector<304x128xf32>
    %11 = arith.maximumf %9, %10 : vector<304x128xf32>
    %12 = arith.truncf %11 : vector<304x128xf32> to vector<304x128xbf16>
    %c0_12 = arith.constant 0 : index
    %c0_13 = arith.constant 0 : index
    %13 = vector.load %arg4[%c0_12, %c0_13] : memref<128x64xbf16, #tpu.memory_space<vmem>>, vector<128x64xbf16>
    %cst_14 = arith.constant dense<0.000000e+00> : vector<304x64xf32>
    %14 = tpu.matmul %12, %13, %cst_14 {dimension_numbers = #tpu.dot_dimension_numbers<[1], [0], [0], [1], [0, 0, 1, 1], [], []>} : vector<304x128xbf16>, vector<128x64xbf16>, vector<304x64xf32> -> vector<304x64xf32>
    %15 = vector.broadcast %3 : vector<1x64xf32> to vector<304x64xf32>
    %16 = arith.addf %14, %15 : vector<304x64xf32>
    %cst_15 = arith.constant 0.000000e+00 : f32
    %17 = vector.broadcast %cst_15 : f32 to vector<304x64xf32>
    %18 = arith.maximumf %16, %17 : vector<304x64xf32>
    %19 = arith.truncf %18 : vector<304x64xf32> to vector<304x64xbf16>
    %c0_16 = arith.constant 0 : index
    %c0_17 = arith.constant 0 : index
    %20 = vector.load %arg6[%c0_16, %c0_17] : memref<64x32xbf16, #tpu.memory_space<vmem>>, vector<64x32xbf16>
    %cst_18 = arith.constant dense<0.000000e+00> : vector<304x32xf32>
    %21 = tpu.matmul %19, %20, %cst_18 {dimension_numbers = #tpu.dot_dimension_numbers<[1], [0], [0], [1], [0, 0, 1, 1], [], []>} : vector<304x64xbf16>, vector<64x32xbf16>, vector<304x32xf32> -> vector<304x32xf32>
    %22 = vector.broadcast %4 : vector<1x32xf32> to vector<304x32xf32>
    %23 = arith.addf %21, %22 : vector<304x32xf32>
    %cst_19 = arith.constant 0.000000e+00 : f32
    %24 = vector.broadcast %cst_19 : f32 to vector<304x32xf32>
    %25 = arith.maximumf %23, %24 : vector<304x32xf32>
    %26 = arith.truncf %25 : vector<304x32xf32> to vector<304x32xbf16>
    %c0_20 = arith.constant 0 : index
    %c0_21 = arith.constant 0 : index
    %27 = vector.load %arg8[%c0_20, %c0_21] : memref<32x128xbf16, #tpu.memory_space<vmem>>, vector<32x128xbf16>
    %cst_22 = arith.constant dense<0.000000e+00> : vector<304x128xf32>
    %28 = tpu.matmul %26, %27, %cst_22 {dimension_numbers = #tpu.dot_dimension_numbers<[1], [0], [0], [1], [0, 0, 1, 1], [], []>} : vector<304x32xbf16>, vector<32x128xbf16>, vector<304x128xf32> -> vector<304x128xf32>
    %29 = vector.broadcast %5 : vector<1x128xf32> to vector<304x128xf32>
    %30 = arith.addf %28, %29 : vector<304x128xf32>
    %c0_23 = arith.constant 0 : index
    %c0_24 = arith.constant 0 : index
    %31 = vector.load %arg10[%c0_23, %c0_24] : memref<304x128xf32, #tpu.memory_space<vmem>>, vector<304x128xf32>
    tpu.vector_store %arg10[%c0_23, %c0_24], %30 {strides = array<i32>} : memref<304x128xf32, #tpu.memory_space<vmem>>, vector<304x128xf32>,
    return
  }
  func.func @transform_0(%arg0: i32) -> (i32, i32) {
    %c0_i32 = arith.constant 0 : i32
    %c0_i32_0 = arith.constant 0 : i32
    return %arg0, %c0_i32 : i32, i32
  }
  func.func @transform_1(%arg0: i32) -> (i32, i32) {
    %c0_i32 = arith.constant 0 : i32
    %c0_i32_0 = arith.constant 0 : i32
    %c0_i32_1 = arith.constant 0 : i32
    return %c0_i32, %c0_i32_0 : i32, i32
  }
  func.func @transform_2(%arg0: i32) -> (i32, i32) {
    %c0_i32 = arith.constant 0 : i32
    %c0_i32_0 = arith.constant 0 : i32
    %c0_i32_1 = arith.constant 0 : i32
    return %c0_i32, %c0_i32_0 : i32, i32
  }
  func.func @transform_3(%arg0: i32) -> (i32, i32) {
    %c0_i32 = arith.constant 0 : i32
    %c0_i32_0 = arith.constant 0 : i32
    %c0_i32_1 = arith.constant 0 : i32
    return %c0_i32, %c0_i32_0 : i32, i32
  }
  func.func @transform_4(%arg0: i32) -> (i32, i32) {
    %c0_i32 = arith.constant 0 : i32
    %c0_i32_0 = arith.constant 0 : i32
    %c0_i32_1 = arith.constant 0 : i32
    return %c0_i32, %c0_i32_0 : i32, i32
  }
  func.func @transform_5(%arg0: i32) -> (i32, i32) {
    %c0_i32 = arith.constant 0 : i32
    %c0_i32_0 = arith.constant 0 : i32
    %c0_i32_1 = arith.constant 0 : i32
    return %c0_i32, %c0_i32_0 : i32, i32
  }
  func.func @transform_6(%arg0: i32) -> (i32, i32) {
    %c0_i32 = arith.constant 0 : i32
    %c0_i32_0 = arith.constant 0 : i32
    %c0_i32_1 = arith.constant 0 : i32
    return %c0_i32, %c0_i32_0 : i32, i32
  }
  func.func @transform_7(%arg0: i32) -> (i32, i32) {
    %c0_i32 = arith.constant 0 : i32
    %c0_i32_0 = arith.constant 0 : i32
    %c0_i32_1 = arith.constant 0 : i32
    return %c0_i32, %c0_i32_0 : i32, i32
  }
  func.func @transform_8(%arg0: i32) -> (i32, i32) {
    %c0_i32 = arith.constant 0 : i32
    %c0_i32_0 = arith.constant 0 : i32
    %c0_i32_1 = arith.constant 0 : i32
    return %c0_i32, %c0_i32_0 : i32, i32
  }
  func.func @transform_9(%arg0: i32) -> (i32, i32) {
    %c0_i32 = arith.constant 0 : i32
    %c0_i32_0 = arith.constant 0 : i32
    return %arg0, %c0_i32 : i32, i32
  }
}

</mosaic_0001>

<bundles_post_ra>
// kernel: tpu_custom_call.1
= control target key start
LH: loop header
LB: loop body
LE: loop exit
PB: predicated region body
PF: predicated region fallthrough
CT: control target
= control target key end

     0   :  { %v1927_v1 = vmov 0.0   ;;  %vm1928_vm0 = vmmov 0   ;;  %vm109_vm1 = vcmask 130048   ;;  %s2551_s0 = inlined_call_operand.vmem [shape: f32[304,16], index: 0, kind: input, shape index: {}]   ;;  %s2552_s1 = inlined_call_operand.vmem [shape: bf16[16,128], index: 1, kind: input, shape index: {}]   ;;  %s2553_s2 = inlined_call_operand.vmem [shape: f32[1,128], index: 2, kind: input, shape index: {}]   ;;  %s2554_s3 = inlined_call_operand.vmem [shape: bf16[128,64], index: 3, kind: input, shape index: {}]   ;;  %s2555_s4 = inlined_call_operand.vmem [shape: f32[1,64], index: 4, kind: input, shape index: {}]   ;;  %s2556_s5 = inlined_call_operand.vmem [shape: bf16[64,32], index: 5, kind: input, shape index: {}]   ;;  %s2557_s6 = inlined_call_operand.vmem [shape: f32[1,32], index: 6, kind: input, shape index: {}]   ;;  %s2558_s7 = inlined_call_operand.vmem [shape: bf16[32,128], index: 7, kind: input, shape index: {}]   ;;  %s2559_s8 = inlined_call_operand.vmem [shape: f32[1,128], index: 8, kind: input, shape index: {}]   ;;  %s2560_s9 = inlined_call_operand.hbm [shape: f32[304,128], index: 9, kind: output, shape index: {}]  }
   0x1   :  { %v1888_v0 = vld [vmem:[%s2552_s1] sm:$0xff]   ;;  %1545 = vmatprep.subr.bf16.mxu0 %v1927_v1  ;;  %v35_v3 = vld [vmem:[%s2551_s0 + $0x8] sm:$0xff]  ;;  %1623 = vmatprep.subr.bf16.mxu1 %v1927_v1  ;;  %v36_v5 = vld [vmem:[%s2551_s0 + $0x10] sm:$0xff] }
   0x2   :  { %v34_v2 = vld [vmem:[%s2551_s0] sm:$0xff]  ;;  %1546 = vmatpush3.bf16.msra.mxu0 %v1888_v0  ;;  %1547 = vmatprep.mubr.msk.bf16.mxu0 %vm1928_vm0, %v1927_v1  ;;  %v37_v6 = vld [vmem:[%s2551_s0 + $0x18] sm:$0xff]  ;;  %v39_v9 = vld [vmem:[%s2551_s0 + $0x28] sm:$0xff] }
   0x3   :  { %v72_v4 = vpack.c.bf16 %v35_v3, %v34_v2  ;;  %1639 = vmatprep.mubr.msk.bf16.mxu1 %vm1928_vm0, %v1927_v1  ;;  %1715 = vmatprep.subr.bf16.mxu0 %v1927_v1  ;;  %v73_v7 = vpack.c.bf16 %v37_v6, %v36_v5  ;;  %v38_v8 = vld [vmem:[%s2551_s0 + $0x20] sm:$0xff]  ;;  %v40_v12 = vld [vmem:[%s2551_s0 + $0x30] sm:$0xff]  ;;  %v41_v13 = vld [vmem:[%s2551_s0 + $0x38] sm:$0xff] }
   0x4   :  { %v74_v10 = vpack.c.bf16 %v39_v9, %v38_v8  ;;  %v1889_v11 = vld [vmem:[%s2554_s3] sm:$0xff]   ;;  %v1890_v14 = vld [vmem:[%s2554_s3 + $0x8] sm:$0xff]   ;;  %v75_v15 = vpack.c.bf16 %v41_v13, %v40_v12 }
   0x5   :  { %1548 = vmatmul.mubr.msk.bf16.vlgmr.msra.gmra.mrb[0].mxu0 %vm109_vm1, %v72_v4  ;;  %1624 = vmatpush3.bf16.msra.mxu1 %v1889_v11 }
   0x6   :  { %1551 = vmatprep.mubr.msk.bf16.mxu0 %vm1928_vm0, %v1927_v1  ;;  %1625 = vmatprep.subr.bf16.mxu1 %v1927_v1 }
   0xd   :  { %1552 = vmatmul.mubr.msk.bf16.gmra.mrb[4].mxu0 %vm109_vm1, %v73_v7 }
   0xe   :  { %1555 = vmatprep.mubr.msk.bf16.mxu0 %vm1928_vm0, %v1927_v1 }
  0x15   :  { %1556 = vmatmul.mubr.msk.bf16.gmra.mrb[8].mxu0 %vm109_vm1, %v74_v10 }
  0x16   :  { %1559 = vmatprep.mubr.msk.bf16.mxu0 %vm1928_vm0, %v1927_v1 }
  0x17   :  { %14 = vsyncpa [#allocation3], 0  ;;  %1626 = vmatpush3.bf16.msra.mxu1 %v1890_v14  ;;  %v1891_v16 = vld [vmem:[%s2554_s3 + $0x10] sm:$0xff]   ;;  %v42_v17 = vld [vmem:[%s2551_s0 + $0x40] sm:$0xff]  ;;  %vm759_vm2 = vcmask 523264   ;;  %vm1081_vm3 = vcmask 261120  }
  0x18   :  { %1627 = vmatprep.subr.bf16.mxu1 %v1927_v1  ;;  %v43_v18 = vld [vmem:[%s2551_s0 + $0x48] sm:$0xff]  ;;  %v1892_v19 = vld [vmem:[%s2554_s3 + $0x18] sm:$0xff]   ;;  %v1893_v21 = vld [vmem:[%s2554_s3 + $0x20] sm:$0xff]  }
  0x19   :  { %v76_v20 = vpack.c.bf16 %v43_v18, %v42_v17  ;;  %v44_v22 = vld [vmem:[%s2551_s0 + $0x50] sm:$0xff]  ;;  %v45_v23 = vld [vmem:[%s2551_s0 + $0x58] sm:$0xff]  ;;  %v1894_v24 = vld [vmem:[%s2554_s3 + $0x28] sm:$0xff]  }
  0x1a   :  { %v77_v25 = vpack.c.bf16 %v45_v23, %v44_v22  ;;  %v46_v26 = vld [vmem:[%s2551_s0 + $0x60] sm:$0xff]  ;;  %v47_v27 = vld [vmem:[%s2551_s0 + $0x68] sm:$0xff]  ;;  %v48_v29 = vld [vmem:[%s2551_s0 + $0x70] sm:$0xff] }
  0x1b   :  { %1628 = vmatpush3.bf16.msra.mxu1 %v1891_v16  ;;  %v78_v28 = vpack.c.bf16 %v47_v27, %v46_v26  ;;  %v49_v30 = vld [vmem:[%s2551_s0 + $0x78] sm:$0xff]  ;;  %v50_v32 = vld [vmem:[%s2551_s0 + $0x80] sm:$0xff]  ;;  %v51_v33 = vld [vmem:[%s2551_s0 + $0x88] sm:$0xff] }
  0x1c   :  { %1629 = vmatprep.subr.bf16.mxu1 %v1927_v1  ;;  %v79_v31 = vpack.c.bf16 %v49_v30, %v48_v29  ;;  %v80_v34 = vpack.c.bf16 %v51_v33, %v50_v32  ;;  %v52_v35 = vld [vmem:[%s2551_s0 + $0x90] sm:$0xff]  ;;  %v53_v36 = vld [vmem:[%s2551_s0 + $0x98] sm:$0xff]  ;;  %v54_v38 = vld [vmem:[%s2551_s0 + $0xa0] sm:$0xff] }
  0x1d   :  { %1560 = vmatmul.mubr.msk.bf16.gmra.mrb[12].mxu0 %vm109_vm1, %v75_v15  ;;  %v81_v37 = vpack.c.bf16 %v53_v36, %v52_v35  ;;  %v55_v39 = vld [vmem:[%s2551_s0 + $0xa8] sm:$0xff]  ;;  %v56_v41 = vld [vmem:[%s2551_s0 + $0xb0] sm:$0xff]  ;;  %v57_v42 = vld [vmem:[%s2551_s0 + $0xb8] sm:$0xff] }
  0x1e   :  { %1563 = vmatprep.mubr.msk.bf16.mxu0 %vm1928_vm0, %v1927_v1  ;;  %v82_v40 = vpack.c.bf16 %v55_v39, %v54_v38  ;;  %v1895_v43 = vld [vmem:[%s2554_s3 + $0x30] sm:$0xff]   ;;  %v83_v44 = vpack.c.bf16 %v57_v42, %v56_v41  ;;  %v1896_v45 = vld [vmem:[%s2554_s3 + $0x38] sm:$0xff]   ;;  %v58_v46 = vld [vmem:[%s2551_s0 + $0xc0] sm:$0xff] }
  0x1f   :  { %1630 = vmatpush3.bf16.msra.mxu1 %v1892_v19  ;;  %v59_v47 = vld [vmem:[%s2551_s0 + $0xc8] sm:$0xff]  ;;  %v60_v49 = vld [vmem:[%s2551_s0 + $0xd0] sm:$0xff]  ;;  %v61_v50 = vld [vmem:[%s2551_s0 + $0xd8] sm:$0xff] }
  0x20   :  { %1631 = vmatprep.subr.bf16.mxu1 %v1927_v1  ;;  %v84_v48 = vpack.c.bf16 %v59_v47, %v58_v46  ;;  %v85_v51 = vpack.c.bf16 %v61_v50, %v60_v49  ;;  %v62_v52 = vld [vmem:[%s2551_s0 + $0xe0] sm:$0xff]  ;;  %v63_v53 = vld [vmem:[%s2551_s0 + $0xe8] sm:$0xff]  ;;  %v64_v55 = vld [vmem:[%s2551_s0 + $0xf0] sm:$0xff] }
  0x21   :  { %v86_v54 = vpack.c.bf16 %v63_v53, %v62_v52  ;;  %v65_v56 = vld [vmem:[%s2551_s0 + $0xf8] sm:$0xff]  ;;  %v66_v58 = vld [vmem:[%s2551_s0 + $0x100] sm:$0xff]  ;;  %v67_v59 = vld [vmem:[%s2551_s0 + $0x108] sm:$0xff] }
  0x22   :  { %v87_v57 = vpack.c.bf16 %v65_v56, %v64_v55  ;;  %v88_v60 = vpack.c.bf16 %v67_v59, %v66_v58  ;;  %v68_v61 = vld [vmem:[%s2551_s0 + $0x110] sm:$0xff]  ;;  %v69_v62 = vld [vmem:[%s2551_s0 + $0x118] sm:$0xff]  ;;  %v70_v0 = vld [vmem:[%s2551_s0 + $0x120] sm:$0xff] }
  0x23   :  { %1632 = vmatpush3.bf16.msra.mxu1 %v1893_v21  ;;  %v89_v63 = vpack.c.bf16 %v69_v62, %v68_v61  ;;  %v71_v2 = vld [vmem:[%s2551_s0 + $0x128] sm:$0xff]  ;;  %v1897_v4 = vld [vmem:[%s2556_s5] sm:$0xff]   ;;  %v1900_v41 = vld [vmem:[%s2556_s5 + $0x18] sm:$0xff]  }
  0x24   :  { %1633 = vmatprep.subr.bf16.mxu1 %v1927_v1  ;;  %v90_v3 = vpack.c.bf16 %v71_v2, %v70_v0  ;;  %1716 = vmatpush3.bf16.msra.mxu0 %v1897_v4  ;;  %v1898_v5 = vld [vmem:[%s2556_s5 + $0x8] sm:$0xff]   ;;  %v2206_v6 = vld [vmem:[%s2553_s2] ss:$0 sm:$0xff] }
  0x25   :  { %1564 = vmatmul.mubr.msk.bf16.gmra.mrb[16].mxu0 %vm109_vm1, %v76_v20  ;;  %1717 = vmatprep.subr.bf16.mxu0 %v1927_v1 }
  0x26   :  { %1567 = vmatprep.mubr.msk.bf16.mxu0 %vm1928_vm0, %v1927_v1 }
  0x27   :  { %1634 = vmatpush3.bf16.msra.mxu1 %v1894_v24 }
  0x28   :  { %1635 = vmatprep.subr.bf16.mxu1 %v1927_v1  ;;  %1718 = vmatpush3.bf16.msra.mxu0 %v1898_v5 }
  0x29   :  { %1719 = vmatprep.subr.bf16.mxu0 %v1927_v1 }
  0x2b   :  { %1636 = vmatpush3.bf16.msra.mxu1 %v1895_v43 }
  0x2c   :  { %1637 = vmatprep.subr.bf16.mxu1 %v1927_v1 }
  0x2d   :  { %1568 = vmatmul.mubr.msk.bf16.gmra.mrb[20].mxu0 %vm109_vm1, %v77_v25 }
  0x2e   :  { %1571 = vmatprep.mubr.msk.bf16.mxu0 %vm1928_vm0, %v1927_v1 }
  0x2f   :  { %1638 = vmatpush3.bf16.msra.mxu1 %v1896_v45 }
  0x30   :  { %1879 = vmatprep.subr.bf16.mxu1 %v1927_v1 }
  0x35   :  { %1572 = vmatmul.mubr.msk.bf16.gmra.mrb[24].mxu0 %vm109_vm1, %v78_v28 }
  0x36   :  { %1575 = vmatprep.mubr.msk.bf16.mxu0 %vm1928_vm0, %v1927_v1 }
  0x3d   :  { %1576 = vmatmul.mubr.msk.bf16.gmra.mrb[28].mxu0 %vm109_vm1, %v79_v31 }
  0x3e   :  { %1579 = vmatprep.mubr.msk.bf16.mxu0 %vm1928_vm0, %v1927_v1 }
  0x45   :  { %1580 = vmatmul.mubr.msk.bf16.gmra.mrb[32].mxu0 %vm109_vm1, %v80_v34 }
  0x46   :  { %1583 = vmatprep.mubr.msk.bf16.mxu0 %vm1928_vm0, %v1927_v1 }
  0x4d   :  { %1584 = vmatmul.mubr.msk.bf16.gmra.mrb[36].mxu0 %vm109_vm1, %v81_v37  ;;  %v1899_v37 = vld [vmem:[%s2556_s5 + $0x10] sm:$0xff]  }
  0x4e   :  { %1587 = vmatprep.mubr.msk.bf16.mxu0 %vm1928_vm0, %v1927_v1  ;;  %1720 = vmatpush3.bf16.msra.mxu0 %v1899_v37 }
  0x4f   :  { %1721 = vmatprep.subr.bf16.mxu0 %v1927_v1 }
  0x52   :  { %1722 = vmatpush3.bf16.msra.mxu0 %v1900_v41 }
  0x53   :  { %1799 = vmatprep.subr.bf16.mxu0 %v1927_v1 }
  0x55   :  { %1588 = vmatmul.mubr.msk.bf16.gmra.mrb[40].mxu0 %vm109_vm1, %v82_v40 }
  0x56   :  { %1591 = vmatprep.mubr.msk.bf16.mxu0 %vm1928_vm0, %v1927_v1 }
  0x5d   :  { %1592 = vmatmul.mubr.msk.bf16.gmra.mrb[44].mxu0 %vm109_vm1, %v83_v44 }
  0x5e   :  { %1595 = vmatprep.mubr.msk.bf16.mxu0 %vm1928_vm0, %v1927_v1 }
  0x65   :  { %1596 = vmatmul.mubr.msk.bf16.gmra.mrb[48].mxu0 %vm109_vm1, %v84_v48 }
  0x66   :  { %1599 = vmatprep.mubr.msk.bf16.mxu0 %vm1928_vm0, %v1927_v1 }
  0x6d   :  { %1600 = vmatmul.mubr.msk.bf16.gmra.mrb[52].mxu0 %vm109_vm1, %v85_v51 }
  0x6e   :  { %1603 = vmatprep.mubr.msk.bf16.mxu0 %vm1928_vm0, %v1927_v1 }
  0x75   :  { %1604 = vmatmul.mubr.msk.bf16.gmra.mrb[56].mxu0 %vm109_vm1, %v86_v54 }
  0x76   :  { %1607 = vmatprep.mubr.msk.bf16.mxu0 %vm1928_vm0, %v1927_v1 }
  0x7d   :  { %1608 = vmatmul.mubr.msk.bf16.gmra.mrb[60].mxu0 %vm109_vm1, %v87_v57 }
  0x7e   :  { %1611 = vmatprep.mubr.msk.bf16.mxu0 %vm1928_vm0, %v1927_v1 }
  0x85   :  { %1612 = vmatmul.mubr.msk.bf16.gmra.mrb[64].mxu0 %vm109_vm1, %v88_v60 }
  0x86   :  { %1615 = vmatprep.mubr.msk.bf16.mxu0 %vm1928_vm0, %v1927_v1 }
  0x8d   :  { %1616 = vmatmul.mubr.msk.bf16.gmra.mrb[68].mxu0 %vm109_vm1, %v89_v63 }
  0x8e   :  { %1619 = vmatprep.mubr.msk.bf16.mxu0 %vm1928_vm0, %v1927_v1 }
  0x95   :  { %1620 = vmatmul.mubr.msk.bf16.gmra.mrb[72].mxu0 %vm109_vm1, %v90_v3 }
  0x96   :  { %1723 = vmatprep.mubr.msk.bf16.mxu0 %vm1928_vm0, %v1927_v1 }
  0xd8   :  { %v201_v7 = vpop.f32.mrb[0].mxu0 }
  0xd9   :  { %v202_v8 = vadd.f32 %v2206_v6, %v201_v7  ;;  %v1549_v9 = vpop.f32.mrb[1].mxu0 }
  0xda   :  { %v204_v10 = vpop.f32.mrb[2].mxu0 }
  0xdb   :  { %v205_v11 = vadd.f32 %v2206_v6, %v204_v10  ;;  %v1550_v12 = vpop.f32.mrb[3].mxu0  ;;  %v352_v13 = vmax.f32 %v202_v8, 0.0 }
  0xdd   :  { %v353_v14 = vmax.f32 %v205_v11, 0.0 }
  0xdf   :  { %v390_v15 = vpack.c.bf16 %v353_v14, %v352_v13 }
  0xe0   :  { %v209_v16 = vpop.f32.mrb[4].mxu0 }
  0xe1   :  { %v210_v17 = vadd.f32 %v2206_v6, %v209_v16  ;;  %v1553_v18 = vpop.f32.mrb[5].mxu0  ;;  %1640 = vmatmul.mubr.bf16.vlgmr.msra.gmra.mrb[0].mxu1 %v390_v15 }
  0xe2   :  { %v212_v19 = vpop.f32.mrb[6].mxu0  ;;  %1643 = vmatprep.mubr.msk.bf16.mxu1 %vm1928_vm0, %v1927_v1 }
  0xe3   :  { %v213_v20 = vadd.f32 %v2206_v6, %v212_v19  ;;  %v1554_v21 = vpop.f32.mrb[7].mxu0  ;;  %v354_v22 = vmax.f32 %v210_v17, 0.0 }
  0xe5   :  { %v355_v23 = vmax.f32 %v213_v20, 0.0 }
  0xe7   :  { %v391_v24 = vpack.c.bf16 %v355_v23, %v354_v22 }
  0xe8   :  { %v217_v25 = vpop.f32.mrb[8].mxu0 }
  0xe9   :  { %v218_v26 = vadd.f32 %v2206_v6, %v217_v25  ;;  %v1557_v27 = vpop.f32.mrb[9].mxu0  ;;  %1644 = vmatmul.mubr.bf16.gmra.mrb[4].mxu1 %v391_v24 }
  0xea   :  { %v220_v28 = vpop.f32.mrb[10].mxu0  ;;  %1647 = vmatprep.mubr.msk.bf16.mxu1 %vm1928_vm0, %v1927_v1 }
  0xeb   :  { %v221_v29 = vadd.f32 %v2206_v6, %v220_v28  ;;  %v1558_v30 = vpop.f32.mrb[11].mxu0  ;;  %v356_v31 = vmax.f32 %v218_v26, 0.0 }
  0xed   :  { %v357_v32 = vmax.f32 %v221_v29, 0.0 }
  0xef   :  { %v392_v33 = vpack.c.bf16 %v357_v32, %v356_v31 }
  0xf0   :  { %v225_v34 = vpop.f32.mrb[12].mxu0 }
  0xf1   :  { %v226_v35 = vadd.f32 %v2206_v6, %v225_v34  ;;  %v1561_v36 = vpop.f32.mrb[13].mxu0  ;;  %1648 = vmatmul.mubr.bf16.gmra.mrb[8].mxu1 %v392_v33 }
  0xf2   :  { %v228_v38 = vpop.f32.mrb[14].mxu0  ;;  %1651 = vmatprep.mubr.msk.bf16.mxu1 %vm1928_vm0, %v1927_v1 }
  0xf3   :  { %v229_v39 = vadd.f32 %v2206_v6, %v228_v38  ;;  %v1562_v40 = vpop.f32.mrb[15].mxu0  ;;  %v358_v42 = vmax.f32 %v226_v35, 0.0 }
  0xf5   :  { %v359_v43 = vmax.f32 %v229_v39, 0.0 }
  0xf7   :  { %v393_v44 = vpack.c.bf16 %v359_v43, %v358_v42 }
  0xf8   :  { %v233_v45 = vpop.f32.mrb[16].mxu0 }
  0xf9   :  { %v234_v46 = vadd.f32 %v2206_v6, %v233_v45  ;;  %v1565_v47 = vpop.f32.mrb[17].mxu0  ;;  %1652 = vmatmul.mubr.bf16.gmra.mrb[12].mxu1 %v393_v44 }
  0xfa   :  { %v236_v48 = vpop.f32.mrb[18].mxu0  ;;  %1655 = vmatprep.mubr.msk.bf16.mxu1 %vm1928_vm0, %v1927_v1 }
  0xfb   :  { %v237_v49 = vadd.f32 %v2206_v6, %v236_v48  ;;  %v1566_v50 = vpop.f32.mrb[19].mxu0  ;;  %v360_v51 = vmax.f32 %v234_v46, 0.0 }
  0xfd   :  { %v361_v52 = vmax.f32 %v237_v49, 0.0 }
  0xff   :  { %v394_v53 = vpack.c.bf16 %v361_v52, %v360_v51 }
 0x100   :  { %v241_v54 = vpop.f32.mrb[20].mxu0 }
 0x101   :  { %v242_v55 = vadd.f32 %v2206_v6, %v241_v54  ;;  %v1569_v56 = vpop.f32.mrb[21].mxu0  ;;  %1656 = vmatmul.mubr.bf16.gmra.mrb[16].mxu1 %v394_v53 }
 0x102   :  { %v244_v57 = vpop.f32.mrb[22].mxu0  ;;  %1659 = vmatprep.mubr.msk.bf16.mxu1 %vm1928_vm0, %v1927_v1 }
 0x103   :  { %v245_v58 = vadd.f32 %v2206_v6, %v244_v57  ;;  %v1570_v59 = vpop.f32.mrb[23].mxu0  ;;  %v362_v60 = vmax.f32 %v242_v55, 0.0 }
 0x105   :  { %v363_v61 = vmax.f32 %v245_v58, 0.0 }
 0x107   :  { %v395_v62 = vpack.c.bf16 %v363_v61, %v362_v60 }
 0x108   :  { %v249_v63 = vpop.f32.mrb[24].mxu0 }
 0x109   :  { %v250_v0 = vadd.f32 %v2206_v6, %v249_v63  ;;  %v1573_v2 = vpop.f32.mrb[25].mxu0  ;;  %1660 = vmatmul.mubr.bf16.gmra.mrb[20].mxu1 %v395_v62 }
 0x10a   :  { %v252_v3 = vpop.f32.mrb[26].mxu0  ;;  %1663 = vmatprep.mubr.msk.bf16.mxu1 %vm1928_vm0, %v1927_v1 }
 0x10b   :  { %v253_v4 = vadd.f32 %v2206_v6, %v252_v3  ;;  %v1574_v5 = vpop.f32.mrb[27].mxu0  ;;  %v364_v7 = vmax.f32 %v250_v0, 0.0 }
 0x10d   :  { %v365_v8 = vmax.f32 %v253_v4, 0.0 }
 0x10f   :  { %v396_v9 = vpack.c.bf16 %v365_v8, %v364_v7 }
 0x110   :  { %v257_v10 = vpop.f32.mrb[28].mxu0 }
 0x111   :  { %v258_v11 = vadd.f32 %v2206_v6, %v257_v10  ;;  %v1577_v12 = vpop.f32.mrb[29].mxu0  ;;  %1664 = vmatmul.mubr.bf16.gmra.mrb[24].mxu1 %v396_v9 }
 0x112   :  { %v260_v13 = vpop.f32.mrb[30].mxu0  ;;  %1667 = vmatprep.mubr.msk.bf16.mxu1 %vm1928_vm0, %v1927_v1 }
 0x113   :  { %v261_v14 = vadd.f32 %v2206_v6, %v260_v13  ;;  %v1578_v15 = vpop.f32.mrb[31].mxu0  ;;  %v366_v16 = vmax.f32 %v258_v11, 0.0 }
 0x115   :  { %v367_v17 = vmax.f32 %v261_v14, 0.0 }
 0x117   :  { %v397_v18 = vpack.c.bf16 %v367_v17, %v366_v16 }
 0x118   :  { %v265_v19 = vpop.f32.mrb[32].mxu0 }
 0x119   :  { %v266_v20 = vadd.f32 %v2206_v6, %v265_v19  ;;  %v1581_v21 = vpop.f32.mrb[33].mxu0  ;;  %1668 = vmatmul.mubr.bf16.gmra.mrb[28].mxu1 %v397_v18 }
 0x11a   :  { %v268_v22 = vpop.f32.mrb[34].mxu0  ;;  %1671 = vmatprep.mubr.msk.bf16.mxu1 %vm1928_vm0, %v1927_v1 }
 0x11b   :  { %v269_v23 = vadd.f32 %v2206_v6, %v268_v22  ;;  %v1582_v24 = vpop.f32.mrb[35].mxu0  ;;  %v368_v25 = vmax.f32 %v266_v20, 0.0 }
 0x11d   :  { %v369_v26 = vmax.f32 %v269_v23, 0.0 }
 0x11f   :  { %v398_v27 = vpack.c.bf16 %v369_v26, %v368_v25 }
 0x120   :  { %v273_v28 = vpop.f32.mrb[36].mxu0 }
 0x121   :  { %v274_v29 = vadd.f32 %v2206_v6, %v273_v28  ;;  %v1585_v30 = vpop.f32.mrb[37].mxu0  ;;  %1672 = vmatmul.mubr.bf16.gmra.mrb[32].mxu1 %v398_v27 }
 0x122   :  { %v276_v31 = vpop.f32.mrb[38].mxu0  ;;  %1675 = vmatprep.mubr.msk.bf16.mxu1 %vm1928_vm0, %v1927_v1 }
 0x123   :  { %v277_v32 = vadd.f32 %v2206_v6, %v276_v31  ;;  %v1586_v33 = vpop.f32.mrb[39].mxu0  ;;  %v370_v34 = vmax.f32 %v274_v29, 0.0 }
 0x125   :  { %v371_v35 = vmax.f32 %v277_v32, 0.0 }
 0x127   :  { %v399_v36 = vpack.c.bf16 %v371_v35, %v370_v34 }
 0x128   :  { %v281_v37 = vpop.f32.mrb[40].mxu0 }
 0x129   :  { %v282_v38 = vadd.f32 %v2206_v6, %v281_v37  ;;  %v1589_v39 = vpop.f32.mrb[41].mxu0  ;;  %1676 = vmatmul.mubr.bf16.gmra.mrb[36].mxu1 %v399_v36 }
 0x12a   :  { %v284_v40 = vpop.f32.mrb[42].mxu0  ;;  %1679 = vmatprep.mubr.msk.bf16.mxu1 %vm1928_vm0, %v1927_v1 }
 0x12b   :  { %v285_v41 = vadd.f32 %v2206_v6, %v284_v40  ;;  %v1590_v42 = vpop.f32.mrb[43].mxu0  ;;  %v372_v43 = vmax.f32 %v282_v38, 0.0 }
 0x12d   :  { %v373_v44 = vmax.f32 %v285_v41, 0.0 }
 0x12f   :  { %v400_v45 = vpack.c.bf16 %v373_v44, %v372_v43 }
 0x130   :  { %v289_v46 = vpop.f32.mrb[44].mxu0 }
 0x131   :  { %v290_v47 = vadd.f32 %v2206_v6, %v289_v46  ;;  %v1593_v48 = vpop.f32.mrb[45].mxu0  ;;  %1680 = vmatmul.mubr.bf16.gmra.mrb[40].mxu1 %v400_v45 }
 0x132   :  { %v292_v49 = vpop.f32.mrb[46].mxu0  ;;  %1683 = vmatprep.mubr.msk.bf16.mxu1 %vm1928_vm0, %v1927_v1 }
 0x133   :  { %v293_v50 = vadd.f32 %v2206_v6, %v292_v49  ;;  %v1594_v51 = vpop.f32.mrb[47].mxu0  ;;  %v374_v52 = vmax.f32 %v290_v47, 0.0 }
 0x135   :  { %v375_v53 = vmax.f32 %v293_v50, 0.0 }
 0x137   :  { %v401_v54 = vpack.c.bf16 %v375_v53, %v374_v52 }
 0x138   :  { %v297_v55 = vpop.f32.mrb[48].mxu0 }
 0x139   :  { %v298_v56 = vadd.f32 %v2206_v6, %v297_v55  ;;  %v1597_v57 = vpop.f32.mrb[49].mxu0  ;;  %1684 = vmatmul.mubr.bf16.gmra.mrb[44].mxu1 %v401_v54 }
 0x13a   :  { %v300_v58 = vpop.f32.mrb[50].mxu0  ;;  %1687 = vmatprep.mubr.msk.bf16.mxu1 %vm1928_vm0, %v1927_v1  ;;  %v2299_v57 = vld [vmem:[%s2555_s4] ss:$0 sm:$0xff] }
 0x13b   :  { %v301_v59 = vadd.f32 %v2206_v6, %v300_v58  ;;  %v1598_v60 = vpop.f32.mrb[51].mxu0  ;;  %v376_v61 = vmax.f32 %v298_v56, 0.0  ;;  %v1901_v56 = vld [vmem:[%s2558_s7] sm:$0xff]  }
 0x13c   :  { %1881 = vmatpush3.bf16.msra.mxu1 %v1901_v56 }
 0x13d   :  { %v377_v62 = vmax.f32 %v301_v59, 0.0  ;;  %1880 = vmatprep.subr.bf16.mxu1 %v1927_v1 }
 0x13f   :  { %v402_v63 = vpack.c.bf16 %v377_v62, %v376_v61 }
 0x140   :  { %v305_v0 = vpop.f32.mrb[52].mxu0 }
 0x141   :  { %v306_v2 = vadd.f32 %v2206_v6, %v305_v0  ;;  %v1601_v3 = vpop.f32.mrb[53].mxu0  ;;  %1688 = vmatmul.mubr.bf16.gmra.mrb[48].mxu1 %v402_v63 }
 0x142   :  { %v308_v4 = vpop.f32.mrb[54].mxu0  ;;  %1691 = vmatprep.mubr.msk.bf16.mxu1 %vm1928_vm0, %v1927_v1 }
 0x143   :  { %v309_v5 = vadd.f32 %v2206_v6, %v308_v4  ;;  %v1602_v7 = vpop.f32.mrb[55].mxu0  ;;  %v378_v8 = vmax.f32 %v306_v2, 0.0 }
 0x145   :  { %v379_v9 = vmax.f32 %v309_v5, 0.0 }
 0x147   :  { %v403_v10 = vpack.c.bf16 %v379_v9, %v378_v8 }
 0x148   :  { %v313_v11 = vpop.f32.mrb[56].mxu0 }
 0x149   :  { %v314_v12 = vadd.f32 %v2206_v6, %v313_v11  ;;  %v1605_v13 = vpop.f32.mrb[57].mxu0  ;;  %1692 = vmatmul.mubr.bf16.gmra.mrb[52].mxu1 %v403_v10 }
 0x14a   :  { %v316_v14 = vpop.f32.mrb[58].mxu0  ;;  %1695 = vmatprep.mubr.msk.bf16.mxu1 %vm1928_vm0, %v1927_v1 }
 0x14b   :  { %v317_v15 = vadd.f32 %v2206_v6, %v316_v14  ;;  %v1606_v16 = vpop.f32.mrb[59].mxu0  ;;  %v380_v17 = vmax.f32 %v314_v12, 0.0 }
 0x14d   :  { %v381_v18 = vmax.f32 %v317_v15, 0.0 }
 0x14f   :  { %v404_v19 = vpack.c.bf16 %v381_v18, %v380_v17 }
 0x150   :  { %v321_v20 = vpop.f32.mrb[60].mxu0 }
 0x151   :  { %v322_v21 = vadd.f32 %v2206_v6, %v321_v20  ;;  %v1609_v22 = vpop.f32.mrb[61].mxu0  ;;  %1696 = vmatmul.mubr.bf16.gmra.mrb[56].mxu1 %v404_v19 }
 0x152   :  { %v324_v23 = vpop.f32.mrb[62].mxu0  ;;  %1699 = vmatprep.mubr.msk.bf16.mxu1 %vm1928_vm0, %v1927_v1 }
 0x153   :  { %v325_v24 = vadd.f32 %v2206_v6, %v324_v23  ;;  %v1610_v25 = vpop.f32.mrb[63].mxu0  ;;  %v382_v26 = vmax.f32 %v322_v21, 0.0 }
 0x154   :  { %v1902_v25 = vld [vmem:[%s2558_s7 + $0x8] sm:$0xff]  }
 0x155   :  { %v383_v27 = vmax.f32 %v325_v24, 0.0  ;;  %1882 = vmatpush3.bf16.msra.mxu1 %v1902_v25 }
 0x157   :  { %v405_v28 = vpack.c.bf16 %v383_v27, %v382_v26 }
 0x158   :  { %v329_v29 = vpop.f32.mrb[64].mxu0 }
 0x159   :  { %v330_v30 = vadd.f32 %v2206_v6, %v329_v29  ;;  %v1613_v31 = vpop.f32.mrb[65].mxu0  ;;  %1700 = vmatmul.mubr.bf16.gmra.mrb[60].mxu1 %v405_v28 }
 0x15a   :  { %v332_v32 = vpop.f32.mrb[66].mxu0  ;;  %1703 = vmatprep.mubr.msk.bf16.mxu1 %vm1928_vm0, %v1927_v1 }
 0x15b   :  { %v333_v33 = vadd.f32 %v2206_v6, %v332_v32  ;;  %v1614_v34 = vpop.f32.mrb[67].mxu0  ;;  %v384_v35 = vmax.f32 %v330_v30, 0.0 }
 0x15d   :  { %v385_v36 = vmax.f32 %v333_v33, 0.0 }
 0x15f   :  { %v406_v37 = vpack.c.bf16 %v385_v36, %v384_v35 }
 0x160   :  { %v337_v38 = vpop.f32.mrb[68].mxu0 }
 0x161   :  { %v338_v39 = vadd.f32 %v2206_v6, %v337_v38  ;;  %v1617_v40 = vpop.f32.mrb[69].mxu0  ;;  %1704 = vmatmul.mubr.bf16.gmra.mrb[64].mxu1 %v406_v37 }
 0x162   :  { %v340_v41 = vpop.f32.mrb[70].mxu0  ;;  %1707 = vmatprep.mubr.msk.bf16.mxu1 %vm1928_vm0, %v1927_v1 }
 0x163   :  { %v341_v42 = vadd.f32 %v2206_v6, %v340_v41  ;;  %v1618_v43 = vpop.f32.mrb[71].mxu0  ;;  %v386_v44 = vmax.f32 %v338_v39, 0.0 }
 0x165   :  { %v387_v45 = vmax.f32 %v341_v42, 0.0 }
 0x167   :  { %v407_v46 = vpack.c.bf16 %v387_v45, %v386_v44 }
 0x168   :  { %v345_v47 = vpop.f32.mrb[72].mxu0 }
 0x169   :  { %v346_v48 = vadd.f32 %v2206_v6, %v345_v47  ;;  %v1621_v49 = vpop.f32.mrb[73].mxu0  ;;  %1708 = vmatmul.mubr.bf16.gmra.mrb[68].mxu1 %v407_v46 }
 0x16a   :  { %v348_v50 = vpop.f32.mrb[74].mxu0  ;;  %1711 = vmatprep.mubr.msk.bf16.mxu1 %vm1928_vm0, %v1927_v1 }
 0x16b   :  { %v349_v51 = vadd.f32 %v2206_v6, %v348_v50  ;;  %v1622_v52 = vpop.f32.mrb[75].mxu0  ;;  %v388_v53 = vmax.f32 %v346_v48, 0.0 }
 0x16d   :  { %v389_v54 = vmax.f32 %v349_v51, 0.0 }
 0x16f   :  { %v408_v55 = vpack.c.bf16 %v389_v54, %v388_v53 }
 0x171   :  { %1712 = vmatmul.mubr.bf16.gmra.mrb[72].mxu1 %v408_v55 }
 0x172   :  { %1807 = vmatprep.mubr.msk.bf16.mxu1 %vm1928_vm0, %v1927_v1 }
 0x1b4   :  { %v513_v6 = vpop.f32.mrb[0].mxu1 }
 0x1b5   :  { %v514_v58 = vadd.f32 %v2299_v57, %v513_v6  ;;  %v1641_v59 = vpop.f32.mrb[1].mxu1 }
 0x1b6   :  { %v516_v60 = vpop.f32.mrb[2].mxu1 }
 0x1b7   :  { %v517_v61 = vadd.f32 %v2299_v57, %v516_v60  ;;  %v1642_v62 = vpop.f32.mrb[3].mxu1  ;;  %v664_v63 = vmax.f32 %v514_v58, 0.0 }
 0x1b9   :  { %v665_v0 = vmax.f32 %v517_v61, 0.0 }
 0x1bb   :  { %v702_v2 = vpack.c.bf16 %v665_v0, %v664_v63 }
 0x1bc   :  { %v521_v3 = vpop.f32.mrb[4].mxu1 }
 0x1bd   :  { %v522_v4 = vadd.f32 %v2299_v57, %v521_v3  ;;  %v1645_v5 = vpop.f32.mrb[5].mxu1  ;;  %1724 = vmatmul.mubr.msk.bf16.vlgmr.msra.gmra.mrb[76].mxu0 %vm759_vm2, %v702_v2 }
 0x1be   :  { %v524_v7 = vpop.f32.mrb[6].mxu1  ;;  %1727 = vmatprep.mubr.msk.bf16.mxu0 %vm1928_vm0, %v1927_v1  ;;  %1800 = vmatpush3.bf16.msra.mxu0 %v1901_v56 }
 0x1bf   :  { %v525_v8 = vadd.f32 %v2299_v57, %v524_v7  ;;  %v1646_v9 = vpop.f32.mrb[7].mxu1  ;;  %1801 = vmatprep.subr.bf16.mxu0 %v1927_v1  ;;  %v666_v10 = vmax.f32 %v522_v4, 0.0 }
 0x1c1   :  { %v667_v11 = vmax.f32 %v525_v8, 0.0 }
 0x1c2   :  { %1802 = vmatpush3.bf16.msra.mxu0 %v1902_v25 }
 0x1c3   :  { %v703_v12 = vpack.c.bf16 %v667_v11, %v666_v10 }
 0x1c4   :  { %v529_v13 = vpop.f32.mrb[8].mxu1 }
 0x1c5   :  { %v530_v14 = vadd.f32 %v2299_v57, %v529_v13  ;;  %v1649_v15 = vpop.f32.mrb[9].mxu1  ;;  %1728 = vmatmul.mubr.msk.bf16.gmra.mrb[80].mxu0 %vm759_vm2, %v703_v12 }
 0x1c6   :  { %v532_v16 = vpop.f32.mrb[10].mxu1  ;;  %1731 = vmatprep.mubr.msk.bf16.mxu0 %vm1928_vm0, %v1927_v1 }
 0x1c7   :  { %v533_v17 = vadd.f32 %v2299_v57, %v532_v16  ;;  %v1650_v18 = vpop.f32.mrb[11].mxu1  ;;  %v668_v19 = vmax.f32 %v530_v14, 0.0 }
 0x1c9   :  { %v669_v20 = vmax.f32 %v533_v17, 0.0 }
 0x1cb   :  { %v704_v21 = vpack.c.bf16 %v669_v20, %v668_v19 }
 0x1cc   :  { %v537_v22 = vpop.f32.mrb[12].mxu1 }
 0x1cd   :  { %v538_v23 = vadd.f32 %v2299_v57, %v537_v22  ;;  %v1653_v24 = vpop.f32.mrb[13].mxu1  ;;  %1732 = vmatmul.mubr.msk.bf16.gmra.mrb[84].mxu0 %vm759_vm2, %v704_v21 }
 0x1ce   :  { %v540_v26 = vpop.f32.mrb[14].mxu1  ;;  %1735 = vmatprep.mubr.msk.bf16.mxu0 %vm1928_vm0, %v1927_v1 }
 0x1cf   :  { %v541_v27 = vadd.f32 %v2299_v57, %v540_v26  ;;  %v1654_v28 = vpop.f32.mrb[15].mxu1  ;;  %v670_v29 = vmax.f32 %v538_v23, 0.0 }
 0x1d1   :  { %v671_v30 = vmax.f32 %v541_v27, 0.0 }
 0x1d3   :  { %v705_v31 = vpack.c.bf16 %v671_v30, %v670_v29 }
 0x1d4   :  { %v545_v32 = vpop.f32.mrb[16].mxu1 }
 0x1d5   :  { %v546_v33 = vadd.f32 %v2299_v57, %v545_v32  ;;  %v1657_v34 = vpop.f32.mrb[17].mxu1  ;;  %1736 = vmatmul.mubr.msk.bf16.gmra.mrb[88].mxu0 %vm759_vm2, %v705_v31 }
 0x1d6   :  { %v548_v35 = vpop.f32.mrb[18].mxu1  ;;  %1739 = vmatprep.mubr.msk.bf16.mxu0 %vm1928_vm0, %v1927_v1 }
 0x1d7   :  { %v549_v36 = vadd.f32 %v2299_v57, %v548_v35  ;;  %v1658_v37 = vpop.f32.mrb[19].mxu1  ;;  %v672_v38 = vmax.f32 %v546_v33, 0.0 }
 0x1d9   :  { %v673_v39 = vmax.f32 %v549_v36, 0.0 }
 0x1db   :  { %v706_v40 = vpack.c.bf16 %v673_v39, %v672_v38 }
 0x1dc   :  { %v553_v41 = vpop.f32.mrb[20].mxu1 }
 0x1dd   :  { %v554_v42 = vadd.f32 %v2299_v57, %v553_v41  ;;  %v1661_v43 = vpop.f32.mrb[21].mxu1  ;;  %1740 = vmatmul.mubr.msk.bf16.gmra.mrb[92].mxu0 %vm759_vm2, %v706_v40 }
 0x1de   :  { %v556_v44 = vpop.f32.mrb[22].mxu1  ;;  %1743 = vmatprep.mubr.msk.bf16.mxu0 %vm1928_vm0, %v1927_v1 }
 0x1df   :  { %v557_v45 = vadd.f32 %v2299_v57, %v556_v44  ;;  %v1662_v46 = vpop.f32.mrb[23].mxu1  ;;  %v674_v47 = vmax.f32 %v554_v42, 0.0 }
 0x1e1   :  { %v675_v48 = vmax.f32 %v557_v45, 0.0 }
 0x1e3   :  { %v707_v49 = vpack.c.bf16 %v675_v48, %v674_v47 }
 0x1e4   :  { %v561_v50 = vpop.f32.mrb[24].mxu1 }
 0x1e5   :  { %v562_v51 = vadd.f32 %v2299_v57, %v561_v50  ;;  %v1665_v52 = vpop.f32.mrb[25].mxu1  ;;  %1744 = vmatmul.mubr.msk.bf16.gmra.mrb[96].mxu0 %vm759_vm2, %v707_v49 }
 0x1e6   :  { %v564_v53 = vpop.f32.mrb[26].mxu1  ;;  %1747 = vmatprep.mubr.msk.bf16.mxu0 %vm1928_vm0, %v1927_v1 }
 0x1e7   :  { %v565_v54 = vadd.f32 %v2299_v57, %v564_v53  ;;  %v1666_v55 = vpop.f32.mrb[27].mxu1  ;;  %v676_v56 = vmax.f32 %v562_v51, 0.0 }
 0x1e9   :  { %v677_v6 = vmax.f32 %v565_v54, 0.0 }
 0x1eb   :  { %v708_v58 = vpack.c.bf16 %v677_v6, %v676_v56 }
 0x1ec   :  { %v569_v59 = vpop.f32.mrb[28].mxu1 }
 0x1ed   :  { %v570_v60 = vadd.f32 %v2299_v57, %v569_v59  ;;  %v1669_v61 = vpop.f32.mrb[29].mxu1  ;;  %1748 = vmatmul.mubr.msk.bf16.gmra.mrb[100].mxu0 %vm759_vm2, %v708_v58 }
 0x1ee   :  { %v572_v62 = vpop.f32.mrb[30].mxu1  ;;  %1751 = vmatprep.mubr.msk.bf16.mxu0 %vm1928_vm0, %v1927_v1 }
 0x1ef   :  { %v573_v63 = vadd.f32 %v2299_v57, %v572_v62  ;;  %v1670_v0 = vpop.f32.mrb[31].mxu1  ;;  %v678_v2 = vmax.f32 %v570_v60, 0.0 }
 0x1f1   :  { %v679_v3 = vmax.f32 %v573_v63, 0.0 }
 0x1f3   :  { %v709_v4 = vpack.c.bf16 %v679_v3, %v678_v2 }
 0x1f4   :  { %v577_v5 = vpop.f32.mrb[32].mxu1 }
 0x1f5   :  { %v578_v7 = vadd.f32 %v2299_v57, %v577_v5  ;;  %v1673_v8 = vpop.f32.mrb[33].mxu1  ;;  %1752 = vmatmul.mubr.msk.bf16.gmra.mrb[104].mxu0 %vm759_vm2, %v709_v4 }
 0x1f6   :  { %v580_v9 = vpop.f32.mrb[34].mxu1  ;;  %1755 = vmatprep.mubr.msk.bf16.mxu0 %vm1928_vm0, %v1927_v1 }
 0x1f7   :  { %v581_v10 = vadd.f32 %v2299_v57, %v580_v9  ;;  %v1674_v11 = vpop.f32.mrb[35].mxu1  ;;  %v680_v12 = vmax.f32 %v578_v7, 0.0 }
 0x1f9   :  { %v681_v13 = vmax.f32 %v581_v10, 0.0 }
 0x1fb   :  { %v710_v14 = vpack.c.bf16 %v681_v13, %v680_v12 }
 0x1fc   :  { %v585_v15 = vpop.f32.mrb[36].mxu1 }
 0x1fd   :  { %v586_v16 = vadd.f32 %v2299_v57, %v585_v15  ;;  %v1677_v17 = vpop.f32.mrb[37].mxu1  ;;  %1756 = vmatmul.mubr.msk.bf16.gmra.mrb[108].mxu0 %vm759_vm2, %v710_v14 }
 0x1fe   :  { %v588_v18 = vpop.f32.mrb[38].mxu1  ;;  %1759 = vmatprep.mubr.msk.bf16.mxu0 %vm1928_vm0, %v1927_v1 }
 0x1ff   :  { %v589_v19 = vadd.f32 %v2299_v57, %v588_v18  ;;  %v1678_v20 = vpop.f32.mrb[39].mxu1  ;;  %v682_v21 = vmax.f32 %v586_v16, 0.0 }
 0x201   :  { %v683_v22 = vmax.f32 %v589_v19, 0.0 }
 0x203   :  { %v711_v23 = vpack.c.bf16 %v683_v22, %v682_v21 }
 0x204   :  { %v593_v24 = vpop.f32.mrb[40].mxu1 }
 0x205   :  { %v594_v25 = vadd.f32 %v2299_v57, %v593_v24  ;;  %v1681_v26 = vpop.f32.mrb[41].mxu1  ;;  %1760 = vmatmul.mubr.msk.bf16.gmra.mrb[112].mxu0 %vm759_vm2, %v711_v23 }
 0x206   :  { %v596_v27 = vpop.f32.mrb[42].mxu1  ;;  %1763 = vmatprep.mubr.msk.bf16.mxu0 %vm1928_vm0, %v1927_v1 }
 0x207   :  { %v597_v28 = vadd.f32 %v2299_v57, %v596_v27  ;;  %v1682_v29 = vpop.f32.mrb[43].mxu1  ;;  %v684_v30 = vmax.f32 %v594_v25, 0.0 }
 0x209   :  { %v685_v31 = vmax.f32 %v597_v28, 0.0 }
 0x20b   :  { %v712_v32 = vpack.c.bf16 %v685_v31, %v684_v30 }
 0x20c   :  { %v601_v33 = vpop.f32.mrb[44].mxu1 }
 0x20d   :  { %v602_v34 = vadd.f32 %v2299_v57, %v601_v33  ;;  %v1685_v35 = vpop.f32.mrb[45].mxu1  ;;  %1764 = vmatmul.mubr.msk.bf16.gmra.mrb[116].mxu0 %vm759_vm2, %v712_v32 }
 0x20e   :  { %v604_v36 = vpop.f32.mrb[46].mxu1  ;;  %1767 = vmatprep.mubr.msk.bf16.mxu0 %vm1928_vm0, %v1927_v1 }
 0x20f   :  { %v605_v37 = vadd.f32 %v2299_v57, %v604_v36  ;;  %v1686_v38 = vpop.f32.mrb[47].mxu1  ;;  %v686_v39 = vmax.f32 %v602_v34, 0.0 }
 0x211   :  { %v687_v40 = vmax.f32 %v605_v37, 0.0 }
 0x213   :  { %v713_v41 = vpack.c.bf16 %v687_v40, %v686_v39 }
 0x214   :  { %v609_v42 = vpop.f32.mrb[48].mxu1 }
 0x215   :  { %v610_v43 = vadd.f32 %v2299_v57, %v609_v42  ;;  %v1689_v44 = vpop.f32.mrb[49].mxu1  ;;  %1768 = vmatmul.mubr.msk.bf16.gmra.mrb[120].mxu0 %vm759_vm2, %v713_v41 }
 0x216   :  { %v612_v45 = vpop.f32.mrb[50].mxu1  ;;  %1771 = vmatprep.mubr.msk.bf16.mxu0 %vm1928_vm0, %v1927_v1 }
 0x217   :  { %v613_v46 = vadd.f32 %v2299_v57, %v612_v45  ;;  %v1690_v47 = vpop.f32.mrb[51].mxu1  ;;  %v688_v48 = vmax.f32 %v610_v43, 0.0  ;;  %v2403_v43 = vld [vmem:[%s2557_s6] ss:$0 sm:$0xff] }
 0x219   :  { %v689_v49 = vmax.f32 %v613_v46, 0.0 }
 0x21b   :  { %v714_v50 = vpack.c.bf16 %v689_v49, %v688_v48 }
 0x21c   :  { %v617_v51 = vpop.f32.mrb[52].mxu1 }
 0x21d   :  { %v618_v52 = vadd.f32 %v2299_v57, %v617_v51  ;;  %v1693_v53 = vpop.f32.mrb[53].mxu1  ;;  %1772 = vmatmul.mubr.msk.bf16.gmra.mrb[124].mxu0 %vm759_vm2, %v714_v50 }
 0x21e   :  { %v620_v54 = vpop.f32.mrb[54].mxu1  ;;  %1775 = vmatprep.mubr.msk.bf16.mxu0 %vm1928_vm0, %v1927_v1 }
 0x21f   :  { %v621_v55 = vadd.f32 %v2299_v57, %v620_v54  ;;  %v1694_v56 = vpop.f32.mrb[55].mxu1  ;;  %v690_v6 = vmax.f32 %v618_v52, 0.0 }
 0x221   :  { %v691_v58 = vmax.f32 %v621_v55, 0.0 }
 0x223   :  { %v715_v59 = vpack.c.bf16 %v691_v58, %v690_v6 }
 0x224   :  { %v625_v60 = vpop.f32.mrb[56].mxu1 }
 0x225   :  { %v626_v61 = vadd.f32 %v2299_v57, %v625_v60  ;;  %v1697_v62 = vpop.f32.mrb[57].mxu1  ;;  %1776 = vmatmul.mubr.msk.bf16.gmra.mrb[128].mxu0 %vm759_vm2, %v715_v59 }
 0x226   :  { %v628_v63 = vpop.f32.mrb[58].mxu1  ;;  %1779 = vmatprep.mubr.msk.bf16.mxu0 %vm1928_vm0, %v1927_v1 }
 0x227   :  { %v629_v0 = vadd.f32 %v2299_v57, %v628_v63  ;;  %v1698_v2 = vpop.f32.mrb[59].mxu1  ;;  %v692_v3 = vmax.f32 %v626_v61, 0.0 }
 0x229   :  { %v693_v4 = vmax.f32 %v629_v0, 0.0 }
 0x22b   :  { %v716_v5 = vpack.c.bf16 %v693_v4, %v692_v3 }
 0x22c   :  { %v633_v7 = vpop.f32.mrb[60].mxu1 }
 0x22d   :  { %v634_v8 = vadd.f32 %v2299_v57, %v633_v7  ;;  %v1701_v9 = vpop.f32.mrb[61].mxu1  ;;  %1780 = vmatmul.mubr.msk.bf16.gmra.mrb[132].mxu0 %vm759_vm2, %v716_v5 }
 0x22e   :  { %v636_v10 = vpop.f32.mrb[62].mxu1  ;;  %1783 = vmatprep.mubr.msk.bf16.mxu0 %vm1928_vm0, %v1927_v1 }
 0x22f   :  { %v637_v11 = vadd.f32 %v2299_v57, %v636_v10  ;;  %v1702_v12 = vpop.f32.mrb[63].mxu1  ;;  %v694_v13 = vmax.f32 %v634_v8, 0.0 }
 0x231   :  { %v695_v14 = vmax.f32 %v637_v11, 0.0 }
 0x233   :  { %v717_v15 = vpack.c.bf16 %v695_v14, %v694_v13 }
 0x234   :  { %v641_v16 = vpop.f32.mrb[64].mxu1 }
 0x235   :  { %v642_v17 = vadd.f32 %v2299_v57, %v641_v16  ;;  %v1705_v18 = vpop.f32.mrb[65].mxu1  ;;  %1784 = vmatmul.mubr.msk.bf16.gmra.mrb[136].mxu0 %vm759_vm2, %v717_v15 }
 0x236   :  { %v644_v19 = vpop.f32.mrb[66].mxu1  ;;  %1787 = vmatprep.mubr.msk.bf16.mxu0 %vm1928_vm0, %v1927_v1 }
 0x237   :  { %v645_v20 = vadd.f32 %v2299_v57, %v644_v19  ;;  %v1706_v21 = vpop.f32.mrb[67].mxu1  ;;  %v696_v22 = vmax.f32 %v642_v17, 0.0 }
 0x239   :  { %v697_v23 = vmax.f32 %v645_v20, 0.0 }
 0x23b   :  { %v718_v24 = vpack.c.bf16 %v697_v23, %v696_v22 }
 0x23c   :  { %v649_v25 = vpop.f32.mrb[68].mxu1 }
 0x23d   :  { %v650_v26 = vadd.f32 %v2299_v57, %v649_v25  ;;  %v1709_v27 = vpop.f32.mrb[69].mxu1  ;;  %1788 = vmatmul.mubr.msk.bf16.gmra.mrb[140].mxu0 %vm759_vm2, %v718_v24 }
 0x23e   :  { %v652_v28 = vpop.f32.mrb[70].mxu1  ;;  %1791 = vmatprep.mubr.msk.bf16.mxu0 %vm1928_vm0, %v1927_v1 }
 0x23f   :  { %v653_v29 = vadd.f32 %v2299_v57, %v652_v28  ;;  %v1710_v30 = vpop.f32.mrb[71].mxu1  ;;  %v698_v31 = vmax.f32 %v650_v26, 0.0 }
 0x241   :  { %v699_v32 = vmax.f32 %v653_v29, 0.0 }
 0x243   :  { %v719_v33 = vpack.c.bf16 %v699_v32, %v698_v31 }
 0x244   :  { %v657_v34 = vpop.f32.mrb[72].mxu1 }
 0x245   :  { %v658_v35 = vadd.f32 %v2299_v57, %v657_v34  ;;  %v1713_v36 = vpop.f32.mrb[73].mxu1  ;;  %1792 = vmatmul.mubr.msk.bf16.gmra.mrb[144].mxu0 %vm759_vm2, %v719_v33 }
 0x246   :  { %v660_v37 = vpop.f32.mrb[74].mxu1  ;;  %1795 = vmatprep.mubr.msk.bf16.mxu0 %vm1928_vm0, %v1927_v1 }
 0x247   :  { %v661_v38 = vadd.f32 %v2299_v57, %v660_v37  ;;  %v1714_v39 = vpop.f32.mrb[75].mxu1  ;;  %v700_v40 = vmax.f32 %v658_v35, 0.0 }
 0x249   :  { %v701_v41 = vmax.f32 %v661_v38, 0.0 }
 0x24b   :  { %v720_v42 = vpack.c.bf16 %v701_v41, %v700_v40 }
 0x24d   :  { %1796 = vmatmul.mubr.msk.bf16.gmra.mrb[148].mxu0 %vm759_vm2, %v720_v42 }
 0x24e   :  { %1803 = vmatprep.mubr.msk.bf16.mxu0 %vm1928_vm0, %v1927_v1 }
 0x290   :  { %v851_v44 = vpop.f32.mrb[76].mxu0 }
 0x291   :  { %v852_v45 = vadd.f32 %v2403_v43, %v851_v44  ;;  %v1725_v46 = vpop.f32.mrb[77].mxu0 }
 0x292   :  { %v854_v47 = vpop.f32.mrb[78].mxu0 }
 0x293   :  { %v855_v57 = vadd.f32 %v2403_v43, %v854_v47  ;;  %v1726_v48 = vpop.f32.mrb[79].mxu0  ;;  %v1002_v49 = vmax.f32 %v852_v45, 0.0 }
 0x295   :  { %v1003_v50 = vmax.f32 %v855_v57, 0.0 }
 0x297   :  { %v1040_v51 = vpack.c.bf16 %v1003_v50, %v1002_v49 }
 0x298   :  { %v859_v52 = vpop.f32.mrb[80].mxu0 }
 0x299   :  { %v860_v53 = vadd.f32 %v2403_v43, %v859_v52  ;;  %v1729_v54 = vpop.f32.mrb[81].mxu0  ;;  %1804 = vmatmul.mubr.msk.bf16.vlgmr.msra.gmra.mrb[152].mxu0 %vm1081_vm3, %v1040_v51 }
 0x29a   :  { %v862_v55 = vpop.f32.mrb[82].mxu0 }
 0x29b   :  { %v863_v56 = vadd.f32 %v2403_v43, %v862_v55  ;;  %v1730_v6 = vpop.f32.mrb[83].mxu0  ;;  %v1004_v58 = vmax.f32 %v860_v53, 0.0 }
 0x29d   :  { %v1005_v59 = vmax.f32 %v863_v56, 0.0 }
 0x29f   :  { %v1041_v60 = vpack.c.bf16 %v1005_v59, %v1004_v58 }
 0x2a0   :  { %v867_v61 = vpop.f32.mrb[84].mxu0 }
 0x2a1   :  { %v868_v62 = vadd.f32 %v2403_v43, %v867_v61  ;;  %v1733_v63 = vpop.f32.mrb[85].mxu0  ;;  %1808 = vmatmul.mubr.msk.bf16.vlgmr.msra.gmra.mrb[76].mxu1 %vm1081_vm3, %v1041_v60 }
 0x2a2   :  { %v870_v0 = vpop.f32.mrb[86].mxu0  ;;  %1811 = vmatprep.mubr.msk.bf16.mxu1 %vm1928_vm0, %v1927_v1 }
 0x2a3   :  { %v871_v2 = vadd.f32 %v2403_v43, %v870_v0  ;;  %v1734_v3 = vpop.f32.mrb[87].mxu0  ;;  %v1006_v4 = vmax.f32 %v868_v62, 0.0 }
 0x2a5   :  { %v1007_v5 = vmax.f32 %v871_v2, 0.0 }
 0x2a7   :  { %v1042_v7 = vpack.c.bf16 %v1007_v5, %v1006_v4 }
 0x2a8   :  { %v875_v8 = vpop.f32.mrb[88].mxu0 }
 0x2a9   :  { %v876_v9 = vadd.f32 %v2403_v43, %v875_v8  ;;  %v1737_v10 = vpop.f32.mrb[89].mxu0  ;;  %1812 = vmatmul.mubr.msk.bf16.gmra.mrb[80].mxu1 %vm1081_vm3, %v1042_v7 }
 0x2aa   :  { %v878_v11 = vpop.f32.mrb[90].mxu0  ;;  %1815 = vmatprep.mubr.msk.bf16.mxu1 %vm1928_vm0, %v1927_v1 }
 0x2ab   :  { %v879_v12 = vadd.f32 %v2403_v43, %v878_v11  ;;  %v1738_v13 = vpop.f32.mrb[91].mxu0  ;;  %v1008_v14 = vmax.f32 %v876_v9, 0.0 }
 0x2ad   :  { %v1009_v15 = vmax.f32 %v879_v12, 0.0 }
 0x2af   :  { %v1043_v16 = vpack.c.bf16 %v1009_v15, %v1008_v14 }
 0x2b0   :  { %v883_v17 = vpop.f32.mrb[92].mxu0 }
 0x2b1   :  { %v884_v18 = vadd.f32 %v2403_v43, %v883_v17  ;;  %v1741_v19 = vpop.f32.mrb[93].mxu0  ;;  %1816 = vmatmul.mubr.msk.bf16.gmra.mrb[84].mxu1 %vm1081_vm3, %v1043_v16 }
 0x2b2   :  { %v886_v20 = vpop.f32.mrb[94].mxu0  ;;  %1819 = vmatprep.mubr.msk.bf16.mxu1 %vm1928_vm0, %v1927_v1 }
 0x2b3   :  { %v887_v21 = vadd.f32 %v2403_v43, %v886_v20  ;;  %v1742_v22 = vpop.f32.mrb[95].mxu0  ;;  %v1010_v23 = vmax.f32 %v884_v18, 0.0 }
 0x2b5   :  { %v1011_v24 = vmax.f32 %v887_v21, 0.0 }
 0x2b7   :  { %v1044_v25 = vpack.c.bf16 %v1011_v24, %v1010_v23 }
 0x2b8   :  { %v891_v26 = vpop.f32.mrb[96].mxu0 }
 0x2b9   :  { %v892_v27 = vadd.f32 %v2403_v43, %v891_v26  ;;  %v1745_v28 = vpop.f32.mrb[97].mxu0  ;;  %1820 = vmatmul.mubr.msk.bf16.gmra.mrb[88].mxu1 %vm1081_vm3, %v1044_v25 }
 0x2ba   :  { %v894_v29 = vpop.f32.mrb[98].mxu0  ;;  %1823 = vmatprep.mubr.msk.bf16.mxu1 %vm1928_vm0, %v1927_v1 }
 0x2bb   :  { %v895_v30 = vadd.f32 %v2403_v43, %v894_v29  ;;  %v1746_v31 = vpop.f32.mrb[99].mxu0  ;;  %v1012_v32 = vmax.f32 %v892_v27, 0.0 }
 0x2bd   :  { %v1013_v33 = vmax.f32 %v895_v30, 0.0 }
 0x2bf   :  { %v1045_v34 = vpack.c.bf16 %v1013_v33, %v1012_v32 }
 0x2c0   :  { %v899_v35 = vpop.f32.mrb[100].mxu0 }
 0x2c1   :  { %v900_v36 = vadd.f32 %v2403_v43, %v899_v35  ;;  %v1749_v37 = vpop.f32.mrb[101].mxu0  ;;  %1824 = vmatmul.mubr.msk.bf16.gmra.mrb[92].mxu1 %vm1081_vm3, %v1045_v34 }
 0x2c2   :  { %v902_v38 = vpop.f32.mrb[102].mxu0  ;;  %1827 = vmatprep.mubr.msk.bf16.mxu1 %vm1928_vm0, %v1927_v1 }
 0x2c3   :  { %v903_v39 = vadd.f32 %v2403_v43, %v902_v38  ;;  %v1750_v40 = vpop.f32.mrb[103].mxu0  ;;  %v1014_v41 = vmax.f32 %v900_v36, 0.0 }
 0x2c5   :  { %v1015_v42 = vmax.f32 %v903_v39, 0.0 }
 0x2c7   :  { %v1046_v44 = vpack.c.bf16 %v1015_v42, %v1014_v41 }
 0x2c8   :  { %v907_v45 = vpop.f32.mrb[104].mxu0 }
 0x2c9   :  { %v908_v46 = vadd.f32 %v2403_v43, %v907_v45  ;;  %v1753_v47 = vpop.f32.mrb[105].mxu0  ;;  %1828 = vmatmul.mubr.msk.bf16.gmra.mrb[96].mxu1 %vm1081_vm3, %v1046_v44 }
 0x2ca   :  { %v910_v57 = vpop.f32.mrb[106].mxu0  ;;  %1831 = vmatprep.mubr.msk.bf16.mxu1 %vm1928_vm0, %v1927_v1 }
 0x2cb   :  { %v911_v48 = vadd.f32 %v2403_v43, %v910_v57  ;;  %v1754_v49 = vpop.f32.mrb[107].mxu0  ;;  %v1016_v50 = vmax.f32 %v908_v46, 0.0 }
 0x2cd   :  { %v1017_v51 = vmax.f32 %v911_v48, 0.0 }
 0x2cf   :  { %v1047_v52 = vpack.c.bf16 %v1017_v51, %v1016_v50 }
 0x2d0   :  { %v915_v53 = vpop.f32.mrb[108].mxu0 }
 0x2d1   :  { %v916_v54 = vadd.f32 %v2403_v43, %v915_v53  ;;  %v1757_v55 = vpop.f32.mrb[109].mxu0  ;;  %1832 = vmatmul.mubr.msk.bf16.gmra.mrb[100].mxu1 %vm1081_vm3, %v1047_v52 }
 0x2d2   :  { %v918_v56 = vpop.f32.mrb[110].mxu0  ;;  %1835 = vmatprep.mubr.msk.bf16.mxu1 %vm1928_vm0, %v1927_v1 }
 0x2d3   :  { %v919_v6 = vadd.f32 %v2403_v43, %v918_v56  ;;  %v1758_v58 = vpop.f32.mrb[111].mxu0  ;;  %v1018_v59 = vmax.f32 %v916_v54, 0.0 }
 0x2d5   :  { %v1019_v60 = vmax.f32 %v919_v6, 0.0 }
 0x2d7   :  { %v1048_v61 = vpack.c.bf16 %v1019_v60, %v1018_v59 }
 0x2d8   :  { %v923_v62 = vpop.f32.mrb[112].mxu0 }
 0x2d9   :  { %v924_v63 = vadd.f32 %v2403_v43, %v923_v62  ;;  %v1761_v0 = vpop.f32.mrb[113].mxu0  ;;  %1836 = vmatmul.mubr.msk.bf16.gmra.mrb[104].mxu1 %vm1081_vm3, %v1048_v61 }
 0x2da   :  { %v926_v2 = vpop.f32.mrb[114].mxu0  ;;  %1839 = vmatprep.mubr.msk.bf16.mxu1 %vm1928_vm0, %v1927_v1 }
 0x2db   :  { %v927_v3 = vadd.f32 %v2403_v43, %v926_v2  ;;  %v1762_v4 = vpop.f32.mrb[115].mxu0  ;;  %v1020_v5 = vmax.f32 %v924_v63, 0.0 }
 0x2dd   :  { %v1021_v7 = vmax.f32 %v927_v3, 0.0 }
 0x2df   :  { %v1049_v8 = vpack.c.bf16 %v1021_v7, %v1020_v5 }
 0x2e0   :  { %v931_v9 = vpop.f32.mrb[116].mxu0 }
 0x2e1   :  { %v932_v10 = vadd.f32 %v2403_v43, %v931_v9  ;;  %v1765_v11 = vpop.f32.mrb[117].mxu0  ;;  %1840 = vmatmul.mubr.msk.bf16.gmra.mrb[108].mxu1 %vm1081_vm3, %v1049_v8 }
 0x2e2   :  { %v934_v12 = vpop.f32.mrb[118].mxu0  ;;  %1843 = vmatprep.mubr.msk.bf16.mxu1 %vm1928_vm0, %v1927_v1 }
 0x2e3   :  { %v935_v13 = vadd.f32 %v2403_v43, %v934_v12  ;;  %v1766_v14 = vpop.f32.mrb[119].mxu0  ;;  %v1022_v15 = vmax.f32 %v932_v10, 0.0 }
 0x2e5   :  { %v1023_v16 = vmax.f32 %v935_v13, 0.0 }
 0x2e7   :  { %v1050_v17 = vpack.c.bf16 %v1023_v16, %v1022_v15 }
 0x2e8   :  { %v939_v18 = vpop.f32.mrb[120].mxu0 }
 0x2e9   :  { %v940_v19 = vadd.f32 %v2403_v43, %v939_v18  ;;  %v1769_v20 = vpop.f32.mrb[121].mxu0  ;;  %1844 = vmatmul.mubr.msk.bf16.gmra.mrb[112].mxu1 %vm1081_vm3, %v1050_v17 }
 0x2ea   :  { %v942_v21 = vpop.f32.mrb[122].mxu0  ;;  %1847 = vmatprep.mubr.msk.bf16.mxu1 %vm1928_vm0, %v1927_v1 }
 0x2eb   :  { %v943_v22 = vadd.f32 %v2403_v43, %v942_v21  ;;  %v1770_v23 = vpop.f32.mrb[123].mxu0  ;;  %v1024_v24 = vmax.f32 %v940_v19, 0.0 }
 0x2ed   :  { %v1025_v25 = vmax.f32 %v943_v22, 0.0 }
 0x2ef   :  { %v1051_v26 = vpack.c.bf16 %v1025_v25, %v1024_v24 }
 0x2f0   :  { %v947_v27 = vpop.f32.mrb[124].mxu0 }
 0x2f1   :  { %v948_v28 = vadd.f32 %v2403_v43, %v947_v27  ;;  %v1773_v29 = vpop.f32.mrb[125].mxu0  ;;  %1848 = vmatmul.mubr.msk.bf16.gmra.mrb[116].mxu1 %vm1081_vm3, %v1051_v26 }
 0x2f2   :  { %v950_v30 = vpop.f32.mrb[126].mxu0  ;;  %1851 = vmatprep.mubr.msk.bf16.mxu1 %vm1928_vm0, %v1927_v1 }
 0x2f3   :  { %v951_v31 = vadd.f32 %v2403_v43, %v950_v30  ;;  %v1774_v32 = vpop.f32.mrb[127].mxu0  ;;  %v1026_v33 = vmax.f32 %v948_v28, 0.0  ;;  %v2499_v28 = vld [vmem:[%s2559_s8] ss:$0 sm:$0xff]  ;;  %s1929_s8 = smov [#allocation2]  }
 0x2f4   :  { %s1367_s26 = sshll.u32 %s1929_s8, 4  ;;  %s1368_s26 = int_to_ptr.vmem [resolvable:$true] %s1367_s26 }
 0x2f5   :  { %v1027_v34 = vmax.f32 %v951_v31, 0.0  ;;  %s1903_s27 = scalar_lea.vmem %s1368_s26, 4864  ;;  %p1908_p1 = scmp.lt.s32.totalorder %s1368_s26, %s1368_s26 }
 0x2f6   :  { %p1904_p0 = scmp.ne.s32.totalorder %s1368_s26, %s1903_s27  ;;  %p1909_p2 = scmp.lt.s32.totalorder %s1903_s27, %s1903_s27 }
 0x2f7   :  { %v1052_v35 = vpack.c.bf16 %v1027_v34, %v1026_v33 }
 0x2f8   :  { %v955_v36 = vpop.f32.mrb[128].mxu0  ;;  %p1910_p3 = por %p1909_p2, %p1908_p1 }
 0x2f9   :  { %v956_v37 = vadd.f32 %v2403_v43, %v955_v36  ;;  %v1777_v38 = vpop.f32.mrb[129].mxu0  ;;  %1852 = vmatmul.mubr.msk.bf16.gmra.mrb[120].mxu1 %vm1081_vm3, %v1052_v35 }
 0x2fa   :  { %v958_v39 = vpop.f32.mrb[130].mxu0  ;;  %1855 = vmatprep.mubr.msk.bf16.mxu1 %vm1928_vm0, %v1927_v1  ;;  %p1911_p4 = pnand %p1910_p3, %p1904_p0 }
 0x2fb   :  { %v959_v40 = vadd.f32 %v2403_v43, %v958_v39  ;;  %v1778_v41 = vpop.f32.mrb[131].mxu0  ;;  %v1028_v42 = vmax.f32 %v956_v37, 0.0 }
 0x2fd   :  { %v1029_v44 = vmax.f32 %v959_v40, 0.0 }
 0x2ff   :  { %v1053_v45 = vpack.c.bf16 %v1029_v44, %v1028_v42 }
 0x300   :  { %v963_v46 = vpop.f32.mrb[132].mxu0 }
 0x301   :  { %v964_v47 = vadd.f32 %v2403_v43, %v963_v46  ;;  %v1781_v57 = vpop.f32.mrb[133].mxu0  ;;  %1856 = vmatmul.mubr.msk.bf16.gmra.mrb[124].mxu1 %vm1081_vm3, %v1053_v45 }
 0x302   :  { %v966_v48 = vpop.f32.mrb[134].mxu0  ;;  %1859 = vmatprep.mubr.msk.bf16.mxu1 %vm1928_vm0, %v1927_v1 }
 0x303   :  { %v967_v49 = vadd.f32 %v2403_v43, %v966_v48  ;;  %v1782_v50 = vpop.f32.mrb[135].mxu0  ;;  %v1030_v51 = vmax.f32 %v964_v47, 0.0 }
 0x305   :  { %v1031_v52 = vmax.f32 %v967_v49, 0.0 }
 0x307   :  { %v1054_v53 = vpack.c.bf16 %v1031_v52, %v1030_v51 }
 0x308   :  { %v971_v54 = vpop.f32.mrb[136].mxu0 }
 0x309   :  { %v972_v55 = vadd.f32 %v2403_v43, %v971_v54  ;;  %v1785_v56 = vpop.f32.mrb[137].mxu0  ;;  %1860 = vmatmul.mubr.msk.bf16.gmra.mrb[128].mxu1 %vm1081_vm3, %v1054_v53 }
 0x30a   :  { %v974_v6 = vpop.f32.mrb[138].mxu0  ;;  %1863 = vmatprep.mubr.msk.bf16.mxu1 %vm1928_vm0, %v1927_v1 }
 0x30b   :  { %v975_v58 = vadd.f32 %v2403_v43, %v974_v6  ;;  %v1786_v59 = vpop.f32.mrb[139].mxu0  ;;  %v1032_v60 = vmax.f32 %v972_v55, 0.0 }
 0x30d   :  { %v1033_v61 = vmax.f32 %v975_v58, 0.0 }
 0x30f   :  { %v1055_v62 = vpack.c.bf16 %v1033_v61, %v1032_v60 }
 0x310   :  { %v979_v63 = vpop.f32.mrb[140].mxu0 }
 0x311   :  { %v980_v0 = vadd.f32 %v2403_v43, %v979_v63  ;;  %v1789_v2 = vpop.f32.mrb[141].mxu0  ;;  %1864 = vmatmul.mubr.msk.bf16.gmra.mrb[132].mxu1 %vm1081_vm3, %v1055_v62 }
 0x312   :  { %v982_v3 = vpop.f32.mrb[142].mxu0  ;;  %1867 = vmatprep.mubr.msk.bf16.mxu1 %vm1928_vm0, %v1927_v1 }
 0x313   :  { %v983_v4 = vadd.f32 %v2403_v43, %v982_v3  ;;  %v1790_v5 = vpop.f32.mrb[143].mxu0  ;;  %v1034_v7 = vmax.f32 %v980_v0, 0.0 }
 0x315   :  { %v1035_v8 = vmax.f32 %v983_v4, 0.0 }
 0x317   :  { %v1056_v9 = vpack.c.bf16 %v1035_v8, %v1034_v7 }
 0x318   :  { %v987_v10 = vpop.f32.mrb[144].mxu0 }
 0x319   :  { %v988_v11 = vadd.f32 %v2403_v43, %v987_v10  ;;  %v1793_v12 = vpop.f32.mrb[145].mxu0  ;;  %1868 = vmatmul.mubr.msk.bf16.gmra.mrb[136].mxu1 %vm1081_vm3, %v1056_v9 }
 0x31a   :  { %v990_v13 = vpop.f32.mrb[146].mxu0  ;;  %1871 = vmatprep.mubr.msk.bf16.mxu1 %vm1928_vm0, %v1927_v1 }
 0x31b   :  { %v991_v14 = vadd.f32 %v2403_v43, %v990_v13  ;;  %v1794_v15 = vpop.f32.mrb[147].mxu0  ;;  %v1036_v16 = vmax.f32 %v988_v11, 0.0 }
 0x31d   :  { %v1037_v17 = vmax.f32 %v991_v14, 0.0 }
 0x31f   :  { %v1057_v18 = vpack.c.bf16 %v1037_v17, %v1036_v16 }
 0x320   :  { %v995_v19 = vpop.f32.mrb[148].mxu0 }
 0x321   :  { %v996_v20 = vadd.f32 %v2403_v43, %v995_v19  ;;  %v1797_v21 = vpop.f32.mrb[149].mxu0  ;;  %1872 = vmatmul.mubr.msk.bf16.gmra.mrb[140].mxu1 %vm1081_vm3, %v1057_v18 }
 0x322   :  { %v998_v22 = vpop.f32.mrb[150].mxu0  ;;  %1875 = vmatprep.mubr.msk.bf16.mxu1 %vm1928_vm0, %v1927_v1 }
 0x323   :  { %v999_v23 = vadd.f32 %v2403_v43, %v998_v22  ;;  %v1798_v24 = vpop.f32.mrb[151].mxu0  ;;  %v1038_v25 = vmax.f32 %v996_v20, 0.0 }
 0x325   :  { %v1039_v26 = vmax.f32 %v999_v23, 0.0 }
 0x327   :  { %v1058_v27 = vpack.c.bf16 %v1039_v26, %v1038_v25 }
 0x329   :  { %1876 = vmatmul.mubr.msk.bf16.gmra.mrb[144].mxu1 %vm1081_vm3, %v1058_v27 }
 0x36c   :  { %v1173_v29 = vpop.f32.mrb[152].mxu0 }
 0x36d   :  { %v1174_v30 = vadd.f32 %v2499_v28, %v1173_v29  ;;  %v1805_v31 = vpop.f32.mrb[153].mxu0 }
 0x36e   :  { %v1176_v32 = vpop.f32.mrb[154].mxu0 }
 0x36f   :  { %1324 = vst [vmem:[#allocation2] sm:$0xff] %v1174_v30  ;;  %v1177_v1 = vadd.f32 %v2499_v28, %v1176_v32  ;;  %v1806_v43 = vpop.f32.mrb[155].mxu0 }
 0x371   :  { %1325 = vst [vmem:[#allocation2 + $0x8] sm:$0xff] %v1177_v1 }
 0x374   :  { %v1181_v33 = vpop.f32.mrb[76].mxu1 }
 0x375   :  { %v1182_v34 = vadd.f32 %v2499_v28, %v1181_v33  ;;  %v1809_v35 = vpop.f32.mrb[77].mxu1 }
 0x376   :  { %v1184_v36 = vpop.f32.mrb[78].mxu1 }
 0x377   :  { %1326 = vst [vmem:[#allocation2 + $0x10] sm:$0xff] %v1182_v34  ;;  %v1185_v37 = vadd.f32 %v2499_v28, %v1184_v36  ;;  %v1810_v38 = vpop.f32.mrb[79].mxu1 }
 0x379   :  { %1327 = vst [vmem:[#allocation2 + $0x18] sm:$0xff] %v1185_v37 }
 0x37c   :  { %v1189_v39 = vpop.f32.mrb[80].mxu1 }
 0x37d   :  { %v1190_v40 = vadd.f32 %v2499_v28, %v1189_v39  ;;  %v1813_v41 = vpop.f32.mrb[81].mxu1 }
 0x37e   :  { %v1192_v42 = vpop.f32.mrb[82].mxu1 }
 0x37f   :  { %1328 = vst [vmem:[#allocation2 + $0x20] sm:$0xff] %v1190_v40  ;;  %v1193_v44 = vadd.f32 %v2499_v28, %v1192_v42  ;;  %v1814_v45 = vpop.f32.mrb[83].mxu1 }
 0x381   :  { %1329 = vst [vmem:[#allocation2 + $0x28] sm:$0xff] %v1193_v44 }
 0x384   :  { %v1197_v46 = vpop.f32.mrb[84].mxu1 }
 0x385   :  { %v1198_v47 = vadd.f32 %v2499_v28, %v1197_v46  ;;  %v1817_v57 = vpop.f32.mrb[85].mxu1 }
 0x386   :  { %v1200_v48 = vpop.f32.mrb[86].mxu1 }
 0x387   :  { %1330 = vst [vmem:[#allocation2 + $0x30] sm:$0xff] %v1198_v47  ;;  %v1201_v49 = vadd.f32 %v2499_v28, %v1200_v48  ;;  %v1818_v50 = vpop.f32.mrb[87].mxu1 }
 0x389   :  { %1331 = vst [vmem:[#allocation2 + $0x38] sm:$0xff] %v1201_v49 }
 0x38c   :  { %v1205_v51 = vpop.f32.mrb[88].mxu1 }
 0x38d   :  { %v1206_v52 = vadd.f32 %v2499_v28, %v1205_v51  ;;  %v1821_v53 = vpop.f32.mrb[89].mxu1 }
 0x38e   :  { %v1208_v54 = vpop.f32.mrb[90].mxu1 }
 0x38f   :  { %1332 = vst [vmem:[#allocation2 + $0x40] sm:$0xff] %v1206_v52  ;;  %v1209_v55 = vadd.f32 %v2499_v28, %v1208_v54  ;;  %v1822_v56 = vpop.f32.mrb[91].mxu1 }
 0x391   :  { %1333 = vst [vmem:[#allocation2 + $0x48] sm:$0xff] %v1209_v55 }
 0x394   :  { %v1213_v6 = vpop.f32.mrb[92].mxu1 }
 0x395   :  { %v1214_v58 = vadd.f32 %v2499_v28, %v1213_v6  ;;  %v1825_v59 = vpop.f32.mrb[93].mxu1 }
 0x396   :  { %v1216_v60 = vpop.f32.mrb[94].mxu1 }
 0x397   :  { %1334 = vst [vmem:[#allocation2 + $0x50] sm:$0xff] %v1214_v58  ;;  %v1217_v61 = vadd.f32 %v2499_v28, %v1216_v60  ;;  %v1826_v62 = vpop.f32.mrb[95].mxu1 }
 0x399   :  { %1335 = vst [vmem:[#allocation2 + $0x58] sm:$0xff] %v1217_v61 }
 0x39c   :  { %v1221_v63 = vpop.f32.mrb[96].mxu1 }
 0x39d   :  { %v1222_v0 = vadd.f32 %v2499_v28, %v1221_v63  ;;  %v1829_v2 = vpop.f32.mrb[97].mxu1 }
 0x39e   :  { %v1224_v3 = vpop.f32.mrb[98].mxu1 }
 0x39f   :  { %1336 = vst [vmem:[#allocation2 + $0x60] sm:$0xff] %v1222_v0  ;;  %v1225_v4 = vadd.f32 %v2499_v28, %v1224_v3  ;;  %v1830_v5 = vpop.f32.mrb[99].mxu1 }
 0x3a1   :  { %1337 = vst [vmem:[#allocation2 + $0x68] sm:$0xff] %v1225_v4 }
 0x3a4   :  { %v1229_v7 = vpop.f32.mrb[100].mxu1 }
 0x3a5   :  { %v1230_v8 = vadd.f32 %v2499_v28, %v1229_v7  ;;  %v1833_v9 = vpop.f32.mrb[101].mxu1 }
 0x3a6   :  { %v1232_v10 = vpop.f32.mrb[102].mxu1 }
 0x3a7   :  { %1338 = vst [vmem:[#allocation2 + $0x70] sm:$0xff] %v1230_v8  ;;  %v1233_v11 = vadd.f32 %v2499_v28, %v1232_v10  ;;  %v1834_v12 = vpop.f32.mrb[103].mxu1 }
 0x3a9   :  { %1339 = vst [vmem:[#allocation2 + $0x78] sm:$0xff] %v1233_v11 }
 0x3ac   :  { %v1237_v13 = vpop.f32.mrb[104].mxu1 }
 0x3ad   :  { %v1238_v14 = vadd.f32 %v2499_v28, %v1237_v13  ;;  %v1837_v15 = vpop.f32.mrb[105].mxu1 }
 0x3ae   :  { %v1240_v16 = vpop.f32.mrb[106].mxu1 }
 0x3af   :  { %1340 = vst [vmem:[#allocation2 + $0x80] sm:$0xff] %v1238_v14  ;;  %v1241_v17 = vadd.f32 %v2499_v28, %v1240_v16  ;;  %v1838_v18 = vpop.f32.mrb[107].mxu1 }
 0x3b1   :  { %1341 = vst [vmem:[#allocation2 + $0x88] sm:$0xff] %v1241_v17 }
 0x3b4   :  { %v1245_v19 = vpop.f32.mrb[108].mxu1 }
 0x3b5   :  { %v1246_v20 = vadd.f32 %v2499_v28, %v1245_v19  ;;  %v1841_v21 = vpop.f32.mrb[109].mxu1 }
 0x3b6   :  { %v1248_v22 = vpop.f32.mrb[110].mxu1 }
 0x3b7   :  { %1342 = vst [vmem:[#allocation2 + $0x90] sm:$0xff] %v1246_v20  ;;  %v1249_v23 = vadd.f32 %v2499_v28, %v1248_v22  ;;  %v1842_v24 = vpop.f32.mrb[111].mxu1 }
 0x3b9   :  { %1343 = vst [vmem:[#allocation2 + $0x98] sm:$0xff] %v1249_v23 }
 0x3bc   :  { %v1253_v25 = vpop.f32.mrb[112].mxu1 }
 0x3bd   :  { %v1254_v26 = vadd.f32 %v2499_v28, %v1253_v25  ;;  %v1845_v27 = vpop.f32.mrb[113].mxu1 }
 0x3be   :  { %v1256_v29 = vpop.f32.mrb[114].mxu1 }
 0x3bf   :  { %1344 = vst [vmem:[#allocation2 + $0xa0] sm:$0xff] %v1254_v26  ;;  %v1257_v30 = vadd.f32 %v2499_v28, %v1256_v29  ;;  %v1846_v31 = vpop.f32.mrb[115].mxu1 }
 0x3c1   :  { %1345 = vst [vmem:[#allocation2 + $0xa8] sm:$0xff] %v1257_v30 }
 0x3c4   :  { %v1261_v32 = vpop.f32.mrb[116].mxu1 }
 0x3c5   :  { %v1262_v1 = vadd.f32 %v2499_v28, %v1261_v32  ;;  %v1849_v43 = vpop.f32.mrb[117].mxu1 }
 0x3c6   :  { %v1264_v33 = vpop.f32.mrb[118].mxu1 }
 0x3c7   :  { %1346 = vst [vmem:[#allocation2 + $0xb0] sm:$0xff] %v1262_v1  ;;  %v1265_v34 = vadd.f32 %v2499_v28, %v1264_v33  ;;  %v1850_v35 = vpop.f32.mrb[119].mxu1 }
 0x3c9   :  { %1347 = vst [vmem:[#allocation2 + $0xb8] sm:$0xff] %v1265_v34 }
 0x3cc   :  { %v1269_v36 = vpop.f32.mrb[120].mxu1 }
 0x3cd   :  { %v1270_v37 = vadd.f32 %v2499_v28, %v1269_v36  ;;  %v1853_v38 = vpop.f32.mrb[121].mxu1 }
 0x3ce   :  { %v1272_v39 = vpop.f32.mrb[122].mxu1 }
 0x3cf   :  { %1348 = vst [vmem:[#allocation2 + $0xc0] sm:$0xff] %v1270_v37  ;;  %v1273_v40 = vadd.f32 %v2499_v28, %v1272_v39  ;;  %v1854_v41 = vpop.f32.mrb[123].mxu1 }
 0x3d1   :  { %1349 = vst [vmem:[#allocation2 + $0xc8] sm:$0xff] %v1273_v40 }
 0x3d4   :  { %v1277_v42 = vpop.f32.mrb[124].mxu1 }
 0x3d5   :  { %v1278_v44 = vadd.f32 %v2499_v28, %v1277_v42  ;;  %v1857_v45 = vpop.f32.mrb[125].mxu1 }
 0x3d6   :  { %v1280_v46 = vpop.f32.mrb[126].mxu1 }
 0x3d7   :  { %1350 = vst [vmem:[#allocation2 + $0xd0] sm:$0xff] %v1278_v44  ;;  %v1281_v47 = vadd.f32 %v2499_v28, %v1280_v46  ;;  %v1858_v57 = vpop.f32.mrb[127].mxu1 }
 0x3d9   :  { %1351 = vst [vmem:[#allocation2 + $0xd8] sm:$0xff] %v1281_v47 }
 0x3dc   :  { %v1285_v48 = vpop.f32.mrb[128].mxu1 }
 0x3dd   :  { %v1286_v49 = vadd.f32 %v2499_v28, %v1285_v48  ;;  %v1861_v50 = vpop.f32.mrb[129].mxu1 }
 0x3de   :  { %v1288_v51 = vpop.f32.mrb[130].mxu1 }
 0x3df   :  { %1352 = vst [vmem:[#allocation2 + $0xe0] sm:$0xff] %v1286_v49  ;;  %v1289_v52 = vadd.f32 %v2499_v28, %v1288_v51  ;;  %v1862_v53 = vpop.f32.mrb[131].mxu1 }
 0x3e1   :  { %1353 = vst [vmem:[#allocation2 + $0xe8] sm:$0xff] %v1289_v52 }
 0x3e4   :  { %v1293_v54 = vpop.f32.mrb[132].mxu1 }
 0x3e5   :  { %v1294_v55 = vadd.f32 %v2499_v28, %v1293_v54  ;;  %v1865_v56 = vpop.f32.mrb[133].mxu1 }
 0x3e6   :  { %v1296_v6 = vpop.f32.mrb[134].mxu1 }
 0x3e7   :  { %1354 = vst [vmem:[#allocation2 + $0xf0] sm:$0xff] %v1294_v55  ;;  %v1297_v58 = vadd.f32 %v2499_v28, %v1296_v6  ;;  %v1866_v59 = vpop.f32.mrb[135].mxu1 }
 0x3e9   :  { %1355 = vst [vmem:[#allocation2 + $0xf8] sm:$0xff] %v1297_v58 }
 0x3ec   :  { %v1301_v60 = vpop.f32.mrb[136].mxu1 }
 0x3ed   :  { %v1302_v61 = vadd.f32 %v2499_v28, %v1301_v60  ;;  %v1869_v62 = vpop.f32.mrb[137].mxu1 }
 0x3ee   :  { %v1304_v63 = vpop.f32.mrb[138].mxu1 }
 0x3ef   :  { %1356 = vst [vmem:[#allocation2 + $0x100] sm:$0xff] %v1302_v61  ;;  %v1305_v0 = vadd.f32 %v2499_v28, %v1304_v63  ;;  %v1870_v2 = vpop.f32.mrb[139].mxu1 }
 0x3f1   :  { %1357 = vst [vmem:[#allocation2 + $0x108] sm:$0xff] %v1305_v0 }
 0x3f4   :  { %v1309_v3 = vpop.f32.mrb[140].mxu1 }
 0x3f5   :  { %v1310_v4 = vadd.f32 %v2499_v28, %v1309_v3  ;;  %v1873_v5 = vpop.f32.mrb[141].mxu1 }
 0x3f6   :  { %v1312_v7 = vpop.f32.mrb[142].mxu1 }
 0x3f7   :  { %1358 = vst [vmem:[#allocation2 + $0x110] sm:$0xff] %v1310_v4  ;;  %v1313_v8 = vadd.f32 %v2499_v28, %v1312_v7  ;;  %v1874_v9 = vpop.f32.mrb[143].mxu1 }
 0x3f9   :  { %1359 = vst [vmem:[#allocation2 + $0x118] sm:$0xff] %v1313_v8 }
 0x3fc   :  { %v1317_v10 = vpop.f32.mrb[144].mxu1 }
 0x3fd   :  { %v1318_v11 = vadd.f32 %v2499_v28, %v1317_v10  ;;  %v1877_v12 = vpop.f32.mrb[145].mxu1 }
 0x3fe   :  { %v1320_v13 = vpop.f32.mrb[146].mxu1 }
 0x3ff   :  { %1360 = vst [vmem:[#allocation2 + $0x120] sm:$0xff] %v1318_v11  ;;  %v1321_v14 = vadd.f32 %v2499_v28, %v1320_v13  ;;  %v1878_v15 = vpop.f32.mrb[147].mxu1 }
 0x401   :  { %1361 = vst [vmem:[#allocation2 + $0x128] sm:$0xff] %v1321_v14 }
 0x402   :  { %1914 = shalt.err (!%p1911_p4)
}
 0x403   :  { %s1915_s30 = scalar_lea.hbm %s2560_s9, 4864 }
 0x404   :  { %p1916_p5 = scmp.ne.s32.totalorder %s2560_s9, %s1915_s30  ;;  %p1919_p6 = scmp.lt.u32.totalorder %s1915_s30, %s2560_s9 }
 0x406   :  { %p1921_p7 = pnand %p1919_p6, %p1916_p5 }
 0x408   :  { %1924 = shalt.err (!%p1921_p7)
}
 0x409   :  { %s1930_s13 = smov 128   ;;  %s1931_s14 = smov 8  }
 0x40a   :  { %1373 = dma.vmem_to_hbm [thread:$0]  %s1368_s26, 4864, %s2560_s9, [#allocation3], %s1930_s13, %s1930_s13, %s1931_s14  }
 0x40b   :  { %1925 = dma.done.wait [#allocation3], 4864  }
 0x40c   :  { %1926 = vsyncadd [#allocation3], 4294962432 }
 0x40d   :  { %1377 = vsyncpa [#allocation3], 1 }

</bundles_post_ra>
